<compile_context>
chip_gen: v7x
topology: tpu7x:2x2x1
jax: 0.10.0
libtpu: 0.0.40
codegen_flags: <defaults>
</compile_context>

<pallas_src>
import numpy as np
import jax
import jax.numpy as jnp
from jax.experimental import pallas as pl
from jax.experimental.pallas import tpu as pltpu


# ---------------------------------------------------------------------------
# In-kernel helpers
# ---------------------------------------------------------------------------
def _row_selector(n_out, n_in, offset):
    """S[p, r] = 1.0 iff r == 2*p + offset -> picks every other row via a matmul."""
    rows = jax.lax.broadcasted_iota(jnp.int32, (n_out, n_in), 0)
    cols = jax.lax.broadcasted_iota(jnp.int32, (n_out, n_in), 1)
    return (cols == 2 * rows + offset).astype(jnp.float32)


# ---------------------------------------------------------------------------
# Fused LeNet kernel: one grid step == one image, everything in VMEM.
# Activation layouts (per image, 2-D, channel interleaved on lanes):
#   x        : [32, 32*3]   x[h, w*3+c]
#   conv1 out: [28, 28*6]   a1[oh, ow*6+f]
#   pooled1  : [14, 162]    p1[ph, q];  pooled value at q = 2*pw*6 + c
#   conv2 out: [10, 10*16]  a2[oh, ow*16+f]
#   pooled2  : [5, 144]     p2[ph, q];  pooled value at q = 32*pw + f
# ---------------------------------------------------------------------------
def _lenet_kernel(x_ref, w1_ref, b1_ref, w2_ref, b2_ref, v1_ref, fb1_ref,
                  wfc2_ref, fb2_ref, wfc3_ref, fb3_ref, out_ref,
                  a1_s, p1_s, a2_s, p2_s):
    f32 = jnp.float32

    # ---------------- conv1 (3->6, 5x5): 5 row-shifted banded matmuls ----------
    acc1 = jnp.zeros((28, 28 * 6), f32)
    for i in range(5):
        xi = x_ref[0, pl.ds(i, 28), :]                                  # [28, 96]
        acc1 = acc1 + jnp.dot(xi, w1_ref[i], preferred_element_type=f32)
    a1_s[...] = jnp.maximum(acc1 + b1_ref[...], 0.0)                    # bias+ReLU

    # ---------------- fused 2x2 max-pool #1 -------------------------------------
    # lane-pair max over the W direction (channel stride 6) ...
    wmax1 = jnp.maximum(a1_s[:, pl.ds(0, 162)], a1_s[:, pl.ds(6, 162)])  # [28,162]
    # ... then even/odd row max + downsample via selection matmuls.
    se1 = _row_selector(14, 28, 0)
    so1 = _row_selector(14, 28, 1)
    p1_s[...] = jnp.maximum(jnp.dot(se1, wmax1, preferred_element_type=f32),
                            jnp.dot(so1, wmax1, preferred_element_type=f32))

    # ---------------- conv2 (6->16, 5x5) ----------------------------------------
    acc2 = jnp.zeros((10, 10 * 16), f32)
    for i in range(5):
        pi = p1_s[pl.ds(i, 10), :]                                      # [10, 162]
        acc2 = acc2 + jnp.dot(pi, w2_ref[i], preferred_element_type=f32)
    a2_s[...] = jnp.maximum(acc2 + b2_ref[...], 0.0)

    # ---------------- fused 2x2 max-pool #2 -------------------------------------
    wmax2 = jnp.maximum(a2_s[:, pl.ds(0, 144)], a2_s[:, pl.ds(16, 144)])  # [10,144]
    se2 = _row_selector(5, 10, 0)
    so2 = _row_selector(5, 10, 1)
    p2_s[...] = jnp.maximum(jnp.dot(se2, wmax2, preferred_element_type=f32),
                            jnp.dot(so2, wmax2, preferred_element_type=f32))

    # ---------------- fc1 (+ReLU); NCHW flatten folded into scattered weight ----
    h1 = jnp.zeros((1, 120), f32)
    for h in range(5):
        h1 = h1 + jnp.dot(p2_s[pl.ds(h, 1), :], v1_ref[h],
                          preferred_element_type=f32)
    h1 = jnp.maximum(h1 + fb1_ref[...], 0.0)

    # ---------------- fc2 (+ReLU), fc3 -------------------------------------------
    h2 = jnp.maximum(jnp.dot(h1, wfc2_ref[...], preferred_element_type=f32)
                     + fb2_ref[...], 0.0)
    out_ref[0] = (jnp.dot(h2, wfc3_ref[...], preferred_element_type=f32)
                  + fb3_ref[...])


# ---------------------------------------------------------------------------
# Forward pass (single pallas_call)
# ---------------------------------------------------------------------------
def _const_spec(shape):
    n = len(shape)
    return pl.BlockSpec(shape, lambda b, _n=n: (0,) * _n)


@jax.jit
def forward(prepped, x_nchw):
    B = x_nchw.shape[0]
    # Only XLA glue: input layout NCHW -> [B, H, W*C] slab (free-ish reshape).
    x = jnp.transpose(x_nchw, (0, 2, 3, 1)).reshape(B, 32, 32 * 3)

    out = pl.pallas_call(
        _lenet_kernel,
        grid=(B,),
        in_specs=[
            pl.BlockSpec((1, 32, 96), lambda b: (b, 0, 0)),   # one image per step
            _const_spec((5, 96, 168)),    # conv1 banded weights
            _const_spec((1, 168)),        # conv1 bias (tiled over ow)
            _const_spec((5, 162, 160)),   # conv2 banded weights
            _const_spec((1, 160)),        # conv2 bias (tiled over ow)
            _const_spec((5, 144, 120)),   # fc1 scattered weights (flatten folded in)
            _const_spec((1, 120)),        # fc1 bias
            _const_spec((120, 84)),       # fc2 weight (pre-transposed)
            _const_spec((1, 84)),         # fc2 bias
            _const_spec((84, 20)),        # fc3 weight (pre-transposed)
            _const_spec((1, 20)),         # fc3 bias
        ],
        out_specs=pl.BlockSpec((1, 1, 20), lambda b: (b, 0, 0)),
        out_shape=jax.ShapeDtypeStruct((B, 1, 20), jnp.float32),
        scratch_shapes=[
            pltpu.VMEM((28, 168), jnp.float32),   # conv1 relu output
            pltpu.VMEM((14, 162), jnp.float32),   # pooled1
            pltpu.VMEM((10, 160), jnp.float32),   # conv2 relu output
            pltpu.VMEM((5, 144), jnp.float32),    # pooled2
        ],
        compiler_params=pltpu.CompilerParams(
            dimension_semantics=("parallel",)),
    )(x, prepped["w1"], prepped["b1"], prepped["w2"], prepped["b2"],
      prepped["v1"], prepped["fb1"], prepped["wfc2"], prepped["fb2"],
      prepped["wfc3"], prepped["fb3"])
    return out.reshape(B, 20)


# ---------------------------------------------------------------------------
# One-time weight preprocessing (hoisted out of the forward path)
# ---------------------------------------------------------------------------
def prepare_params(params):
    w1 = np.asarray(params["conv1_w"], np.float32)    # [6, 3, 5, 5]
    b1 = np.asarray(params["conv1_b"], np.float32)
    w2 = np.asarray(params["conv2_w"], np.float32)    # [16, 6, 5, 5]
    b2 = np.asarray(params["conv2_b"], np.float32)
    f1w = np.asarray(params["fc1_w"], np.float32)     # [120, 400]
    f1b = np.asarray(params["fc1_b"], np.float32)
    f2w = np.asarray(params["fc2_w"], np.float32)     # [84, 120]
    f2b = np.asarray(params["fc2_b"], np.float32)
    f3w = np.asarray(params["fc3_w"], np.float32)     # [20, 84]
    f3b = np.asarray(params["fc3_b"], np.float32)

    # conv1: out[oh, ow*6+f] = sum_i x2d[oh+i, :] @ W1[i]
    #        W1[i][(ow+j)*3 + c, ow*6 + f] = w1[f, c, i, j]
    W1 = np.zeros((5, 32 * 3, 28 * 6), np.float32)
    for i in range(5):
        for j in range(5):
            wij = w1[:, :, i, j].T                    # [cin=3, cout=6]
            for ow in range(28):
                W1[i, (ow + j) * 3:(ow + j) * 3 + 3, ow * 6:ow * 6 + 6] = wij
    B1 = np.tile(b1, 28)[None, :]                     # [1, 168]

    # conv2 reads pooled1 at columns 2*(ow+j)*6 + c of the 162-lane map.
    #        W2[i][2*(ow+j)*6 + c, ow*16 + f] = w2[f, c, i, j]
    W2 = np.zeros((5, 162, 10 * 16), np.float32)
    for i in range(5):
        for j in range(5):
            wij = w2[:, :, i, j].T                    # [cin=6, cout=16]
            for ow in range(10):
                r0 = 2 * (ow + j) * 6
                W2[i, r0:r0 + 6, ow * 16:ow * 16 + 16] = wij
    B2 = np.tile(b2, 10)[None, :]                     # [1, 160]

    # fc1 with PyTorch's NCHW flatten folded in: input is p2[h, 32*w + c].
    #        V1[h][32*w + c, k] = fc1_w[k, c*25 + h*5 + w]
    V1 = np.zeros((5, 144, 120), np.float32)
    for h in range(5):
        for w in range(5):
            for c in range(16):
                V1[h, 32 * w + c, :] = f1w[:, c * 25 + h * 5 + w]

    return {
        "w1": jnp.asarray(W1), "b1": jnp.asarray(B1),
        "w2": jnp.asarray(W2), "b2": jnp.asarray(B2),
        "v1": jnp.asarray(V1), "fb1": jnp.asarray(f1b[None, :]),
        "wfc2": jnp.asarray(f2w.T), "fb2": jnp.asarray(f2b[None, :]),
        "wfc3": jnp.asarray(f3w.T), "fb3": jnp.asarray(f3b[None, :]),
    }


# ---------------------------------------------------------------------------
# Deterministic parameter init (same shapes/layout as the torch module)
# ---------------------------------------------------------------------------
def init_params(key):
    ks = jax.random.split(key, 10)

    def dense(kw, kb, out_f, in_f):
        s = 1.0 / np.sqrt(in_f)
        return (jax.random.uniform(kw, (out_f, in_f), jnp.float32, -s, s),
                jax.random.uniform(kb, (out_f,), jnp.float32, -s, s))

    def conv(kw, kb, cout, cin, k):
        s = 1.0 / np.sqrt(cin * k * k)
        return (jax.random.uniform(kw, (cout, cin, k, k), jnp.float32, -s, s),
                jax.random.uniform(kb, (cout,), jnp.float32, -s, s))

    c1w, c1b = conv(ks[0], ks[1], 6, 3, 5)
    c2w, c2b = conv(ks[2], ks[3], 16, 6, 5)
    f1w, f1b = dense(ks[4], ks[5], 120, 16 * 5 * 5)
    f2w, f2b = dense(ks[6], ks[7], 84, 120)
    f3w, f3b = dense(ks[8], ks[9], 20, 84)
    return {
        "conv1_w": c1w, "conv1_b": c1b,
        "conv2_w": c2w, "conv2_b": c2b,
        "fc1_w": f1w, "fc1_b": f1b,
        "fc2_w": f2w, "fc2_b": f2b,
        "fc3_w": f3w, "fc3_b": f3b,
    }


if __name__ == "__main__":
    key = jax.random.PRNGKey(0)
    pkey, xkey = jax.random.split(key)
    params = init_params(pkey)
    prepped = prepare_params(params)          # one-time, off the hot path

    # Module implies 3x32x32 inputs (LeNet-on-CIFAR sizing). Small batch of 2.
    x = jax.random.normal(xkey, (2, 3, 32, 32), jnp.float32)

    out = jax.block_until_ready(forward(prepped, x))
    assert out.shape == (2, 20), out.shape
    print("KERNEL_OK")
</pallas_src>

<mosaic_0001>
module attributes {stable_mosaic.version = 11 : i64} {
  func.func @_lenet_kernel(%arg0: i32, %arg1: memref<1x32x96xf32, #tpu.memory_space<vmem>>, %arg2: memref<5x96x168xf32, #tpu.memory_space<vmem>>, %arg3: memref<1x168xf32, #tpu.memory_space<vmem>>, %arg4: memref<5x162x160xf32, #tpu.memory_space<vmem>>, %arg5: memref<1x160xf32, #tpu.memory_space<vmem>>, %arg6: memref<5x144x120xf32, #tpu.memory_space<vmem>>, %arg7: memref<1x120xf32, #tpu.memory_space<vmem>>, %arg8: memref<120x84xf32, #tpu.memory_space<vmem>>, %arg9: memref<1x84xf32, #tpu.memory_space<vmem>>, %arg10: memref<84x20xf32, #tpu.memory_space<vmem>>, %arg11: memref<1x20xf32, #tpu.memory_space<vmem>>, %arg12: memref<1x1x20xf32, #tpu.memory_space<vmem>>, %arg13: memref<28x168xf32, #tpu.memory_space<vmem>>, %arg14: memref<14x162xf32, #tpu.memory_space<vmem>>, %arg15: memref<10x160xf32, #tpu.memory_space<vmem>>, %arg16: memref<5x144xf32, #tpu.memory_space<vmem>>) attributes {dimension_semantics = [#tpu.dimension_semantics<parallel>], iteration_bounds = array<i64: 2>, scalar_prefetch = 0 : i64, scratch_operands = 4 : i64, tpu.core_type = #tpu.core_type<tc>, window_params = [{transform_indices = @transform_0, window_bounds = array<i64: 1, 32, 96>}, {pipeline_mode = #tpu.pipeline_mode<synchronous>, transform_indices = @transform_1, window_bounds = array<i64: 5, 96, 168>}, {pipeline_mode = #tpu.pipeline_mode<synchronous>, transform_indices = @transform_2, window_bounds = array<i64: 1, 168>}, {pipeline_mode = #tpu.pipeline_mode<synchronous>, transform_indices = @transform_3, window_bounds = array<i64: 5, 162, 160>}, {pipeline_mode = #tpu.pipeline_mode<synchronous>, transform_indices = @transform_4, window_bounds = array<i64: 1, 160>}, {pipeline_mode = #tpu.pipeline_mode<synchronous>, transform_indices = @transform_5, window_bounds = array<i64: 5, 144, 120>}, {pipeline_mode = #tpu.pipeline_mode<synchronous>, transform_indices = @transform_6, window_bounds = array<i64: 1, 120>}, {pipeline_mode = #tpu.pipeline_mode<synchronous>, transform_indices = @transform_7, window_bounds = array<i64: 120, 84>}, {pipeline_mode = #tpu.pipeline_mode<synchronous>, transform_indices = @transform_8, window_bounds = array<i64: 1, 84>}, {pipeline_mode = #tpu.pipeline_mode<synchronous>, transform_indices = @transform_9, window_bounds = array<i64: 84, 20>}, {pipeline_mode = #tpu.pipeline_mode<synchronous>, transform_indices = @transform_10, window_bounds = array<i64: 1, 20>}, {transform_indices = @transform_11, window_bounds = array<i64: 1, 1, 20>}]} {
    %cst = arith.constant 0.000000e+00 : f32
    %0 = vector.broadcast %cst : f32 to vector<28x168xf32>
    %c0 = arith.constant 0 : index
    %c0_0 = arith.constant 0 : index
    %c0_1 = arith.constant 0 : index
    %1 = vector.load %arg1[%c0, %c0_0, %c0_1] : memref<1x32x96xf32, #tpu.memory_space<vmem>>, vector<1x28x96xf32>
    %2 = vector.shape_cast %1 : vector<1x28x96xf32> to vector<28x96xf32>
    %c0_2 = arith.constant 0 : index
    %c0_3 = arith.constant 0 : index
    %c0_4 = arith.constant 0 : index
    %3 = vector.load %arg2[%c0_2, %c0_3, %c0_4] : memref<5x96x168xf32, #tpu.memory_space<vmem>>, vector<1x96x168xf32>
    %4 = vector.shape_cast %3 : vector<1x96x168xf32> to vector<96x168xf32>
    %cst_5 = arith.constant dense<0.000000e+00> : vector<28x168xf32>
    %5 = tpu.matmul %2, %4, %cst_5 {dimension_numbers = #tpu.dot_dimension_numbers<[1], [0], [0], [1], [0, 0, 1, 1], [], []>} : vector<28x96xf32>, vector<96x168xf32>, vector<28x168xf32> -> vector<28x168xf32>
    %6 = arith.addf %0, %5 : vector<28x168xf32>
    %c0_6 = arith.constant 0 : index
    %c1 = arith.constant 1 : index
    %c0_7 = arith.constant 0 : index
    %7 = vector.load %arg1[%c0_6, %c1, %c0_7] : memref<1x32x96xf32, #tpu.memory_space<vmem>>, vector<1x28x96xf32>
    %8 = vector.shape_cast %7 : vector<1x28x96xf32> to vector<28x96xf32>
    %c1_8 = arith.constant 1 : index
    %c0_9 = arith.constant 0 : index
    %c0_10 = arith.constant 0 : index
    %9 = vector.load %arg2[%c1_8, %c0_9, %c0_10] : memref<5x96x168xf32, #tpu.memory_space<vmem>>, vector<1x96x168xf32>
    %10 = vector.shape_cast %9 : vector<1x96x168xf32> to vector<96x168xf32>
    %cst_11 = arith.constant dense<0.000000e+00> : vector<28x168xf32>
    %11 = tpu.matmul %8, %10, %cst_11 {dimension_numbers = #tpu.dot_dimension_numbers<[1], [0], [0], [1], [0, 0, 1, 1], [], []>} : vector<28x96xf32>, vector<96x168xf32>, vector<28x168xf32> -> vector<28x168xf32>
    %12 = arith.addf %6, %11 : vector<28x168xf32>
    %c0_12 = arith.constant 0 : index
    %c2 = arith.constant 2 : index
    %c0_13 = arith.constant 0 : index
    %13 = vector.load %arg1[%c0_12, %c2, %c0_13] : memref<1x32x96xf32, #tpu.memory_space<vmem>>, vector<1x28x96xf32>
    %14 = vector.shape_cast %13 : vector<1x28x96xf32> to vector<28x96xf32>
    %c2_14 = arith.constant 2 : index
    %c0_15 = arith.constant 0 : index
    %c0_16 = arith.constant 0 : index
    %15 = vector.load %arg2[%c2_14, %c0_15, %c0_16] : memref<5x96x168xf32, #tpu.memory_space<vmem>>, vector<1x96x168xf32>
    %16 = vector.shape_cast %15 : vector<1x96x168xf32> to vector<96x168xf32>
    %cst_17 = arith.constant dense<0.000000e+00> : vector<28x168xf32>
    %17 = tpu.matmul %14, %16, %cst_17 {dimension_numbers = #tpu.dot_dimension_numbers<[1], [0], [0], [1], [0, 0, 1, 1], [], []>} : vector<28x96xf32>, vector<96x168xf32>, vector<28x168xf32> -> vector<28x168xf32>
    %18 = arith.addf %12, %17 : vector<28x168xf32>
    %c0_18 = arith.constant 0 : index
    %c3 = arith.constant 3 : index
    %c0_19 = arith.constant 0 : index
    %19 = vector.load %arg1[%c0_18, %c3, %c0_19] : memref<1x32x96xf32, #tpu.memory_space<vmem>>, vector<1x28x96xf32>
    %20 = vector.shape_cast %19 : vector<1x28x96xf32> to vector<28x96xf32>
    %c3_20 = arith.constant 3 : index
    %c0_21 = arith.constant 0 : index
    %c0_22 = arith.constant 0 : index
    %21 = vector.load %arg2[%c3_20, %c0_21, %c0_22] : memref<5x96x168xf32, #tpu.memory_space<vmem>>, vector<1x96x168xf32>
    %22 = vector.shape_cast %21 : vector<1x96x168xf32> to vector<96x168xf32>
    %cst_23 = arith.constant dense<0.000000e+00> : vector<28x168xf32>
    %23 = tpu.matmul %20, %22, %cst_23 {dimension_numbers = #tpu.dot_dimension_numbers<[1], [0], [0], [1], [0, 0, 1, 1], [], []>} : vector<28x96xf32>, vector<96x168xf32>, vector<28x168xf32> -> vector<28x168xf32>
    %24 = arith.addf %18, %23 : vector<28x168xf32>
    %c0_24 = arith.constant 0 : index
    %c4 = arith.constant 4 : index
    %c0_25 = arith.constant 0 : index
    %25 = vector.load %arg1[%c0_24, %c4, %c0_25] : memref<1x32x96xf32, #tpu.memory_space<vmem>>, vector<1x28x96xf32>
    %26 = vector.shape_cast %25 : vector<1x28x96xf32> to vector<28x96xf32>
    %c4_26 = arith.constant 4 : index
    %c0_27 = arith.constant 0 : index
    %c0_28 = arith.constant 0 : index
    %27 = vector.load %arg2[%c4_26, %c0_27, %c0_28] : memref<5x96x168xf32, #tpu.memory_space<vmem>>, vector<1x96x168xf32>
    %28 = vector.shape_cast %27 : vector<1x96x168xf32> to vector<96x168xf32>
    %cst_29 = arith.constant dense<0.000000e+00> : vector<28x168xf32>
    %29 = tpu.matmul %26, %28, %cst_29 {dimension_numbers = #tpu.dot_dimension_numbers<[1], [0], [0], [1], [0, 0, 1, 1], [], []>} : vector<28x96xf32>, vector<96x168xf32>, vector<28x168xf32> -> vector<28x168xf32>
    %30 = arith.addf %24, %29 : vector<28x168xf32>
    %c0_30 = arith.constant 0 : index
    %c0_31 = arith.constant 0 : index
    %31 = vector.load %arg3[%c0_30, %c0_31] : memref<1x168xf32, #tpu.memory_space<vmem>>, vector<1x168xf32>
    %32 = vector.broadcast %31 : vector<1x168xf32> to vector<28x168xf32>
    %33 = arith.addf %30, %32 : vector<28x168xf32>
    %cst_32 = arith.constant 0.000000e+00 : f32
    %34 = vector.broadcast %cst_32 : f32 to vector<28x168xf32>
    %35 = arith.maximumf %33, %34 : vector<28x168xf32>
    %c0_33 = arith.constant 0 : index
    %c0_34 = arith.constant 0 : index
    %36 = vector.load %arg13[%c0_33, %c0_34] : memref<28x168xf32, #tpu.memory_space<vmem>>, vector<28x168xf32>
    tpu.vector_store %arg13[%c0_33, %c0_34], %35 {strides = array<i32>} : memref<28x168xf32, #tpu.memory_space<vmem>>, vector<28x168xf32>,
    %c0_35 = arith.constant 0 : index
    %c0_36 = arith.constant 0 : index
    %37 = vector.load %arg13[%c0_35, %c0_36] : memref<28x168xf32, #tpu.memory_space<vmem>>, vector<28x162xf32>
    %c0_37 = arith.constant 0 : index
    %c6 = arith.constant 6 : index
    %38 = vector.load %arg13[%c0_37, %c6] : memref<28x168xf32, #tpu.memory_space<vmem>>, vector<28x162xf32>
    %39 = arith.maximumf %37, %38 : vector<28x162xf32>
    %40 = tpu.iota {dimensions = array<i32: 0>} : vector<14x28xi32>
    %41 = tpu.iota {dimensions = array<i32: 1>} : vector<14x28xi32>
    %c2_i32 = arith.constant 2 : i32
    %42 = vector.broadcast %c2_i32 : i32 to vector<14x28xi32>
    %43 = arith.muli %42, %40 : vector<14x28xi32>
    %c0_i32 = arith.constant 0 : i32
    %44 = vector.broadcast %c0_i32 : i32 to vector<14x28xi32>
    %45 = arith.addi %43, %44 : vector<14x28xi32>
    %46 = arith.cmpi eq, %41, %45 : vector<14x28xi32>
    %47 = arith.extui %46 : vector<14x28xi1> to vector<14x28xi32>
    %48 = arith.sitofp %47 : vector<14x28xi32> to vector<14x28xf32>
    %49 = tpu.iota {dimensions = array<i32: 0>} : vector<14x28xi32>
    %50 = tpu.iota {dimensions = array<i32: 1>} : vector<14x28xi32>
    %c2_i32_38 = arith.constant 2 : i32
    %51 = vector.broadcast %c2_i32_38 : i32 to vector<14x28xi32>
    %52 = arith.muli %51, %49 : vector<14x28xi32>
    %c1_i32 = arith.constant 1 : i32
    %53 = vector.broadcast %c1_i32 : i32 to vector<14x28xi32>
    %54 = arith.addi %52, %53 : vector<14x28xi32>
    %55 = arith.cmpi eq, %50, %54 : vector<14x28xi32>
    %56 = arith.extui %55 : vector<14x28xi1> to vector<14x28xi32>
    %57 = arith.sitofp %56 : vector<14x28xi32> to vector<14x28xf32>
    %cst_39 = arith.constant dense<0.000000e+00> : vector<14x162xf32>
    %58 = tpu.matmul %48, %39, %cst_39 {dimension_numbers = #tpu.dot_dimension_numbers<[1], [0], [0], [1], [0, 0, 1, 1], [], []>} : vector<14x28xf32>, vector<28x162xf32>, vector<14x162xf32> -> vector<14x162xf32>
    %cst_40 = arith.constant dense<0.000000e+00> : vector<14x162xf32>
    %59 = tpu.matmul %57, %39, %cst_40 {dimension_numbers = #tpu.dot_dimension_numbers<[1], [0], [0], [1], [0, 0, 1, 1], [], []>} : vector<14x28xf32>, vector<28x162xf32>, vector<14x162xf32> -> vector<14x162xf32>
    %60 = arith.maximumf %58, %59 : vector<14x162xf32>
    %c0_41 = arith.constant 0 : index
    %c0_42 = arith.constant 0 : index
    %61 = vector.load %arg14[%c0_41, %c0_42] : memref<14x162xf32, #tpu.memory_space<vmem>>, vector<14x162xf32>
    tpu.vector_store %arg14[%c0_41, %c0_42], %60 {strides = array<i32>} : memref<14x162xf32, #tpu.memory_space<vmem>>, vector<14x162xf32>,
    %cst_43 = arith.constant 0.000000e+00 : f32
    %62 = vector.broadcast %cst_43 : f32 to vector<10x160xf32>
    %c0_44 = arith.constant 0 : index
    %c0_45 = arith.constant 0 : index
    %63 = vector.load %arg14[%c0_44, %c0_45] : memref<14x162xf32, #tpu.memory_space<vmem>>, vector<10x162xf32>
    %c0_46 = arith.constant 0 : index
    %c0_47 = arith.constant 0 : index
    %c0_48 = arith.constant 0 : index
    %64 = vector.load %arg4[%c0_46, %c0_47, %c0_48] : memref<5x162x160xf32, #tpu.memory_space<vmem>>, vector<1x162x160xf32>
    %65 = vector.shape_cast %64 : vector<1x162x160xf32> to vector<162x160xf32>
    %cst_49 = arith.constant dense<0.000000e+00> : vector<10x160xf32>
    %66 = tpu.matmul %63, %65, %cst_49 {dimension_numbers = #tpu.dot_dimension_numbers<[1], [0], [0], [1], [0, 0, 1, 1], [], []>} : vector<10x162xf32>, vector<162x160xf32>, vector<10x160xf32> -> vector<10x160xf32>
    %67 = arith.addf %62, %66 : vector<10x160xf32>
    %c1_50 = arith.constant 1 : index
    %c0_51 = arith.constant 0 : index
    %68 = vector.load %arg14[%c1_50, %c0_51] : memref<14x162xf32, #tpu.memory_space<vmem>>, vector<10x162xf32>
    %c1_52 = arith.constant 1 : index
    %c0_53 = arith.constant 0 : index
    %c0_54 = arith.constant 0 : index
    %69 = vector.load %arg4[%c1_52, %c0_53, %c0_54] : memref<5x162x160xf32, #tpu.memory_space<vmem>>, vector<1x162x160xf32>
    %70 = vector.shape_cast %69 : vector<1x162x160xf32> to vector<162x160xf32>
    %cst_55 = arith.constant dense<0.000000e+00> : vector<10x160xf32>
    %71 = tpu.matmul %68, %70, %cst_55 {dimension_numbers = #tpu.dot_dimension_numbers<[1], [0], [0], [1], [0, 0, 1, 1], [], []>} : vector<10x162xf32>, vector<162x160xf32>, vector<10x160xf32> -> vector<10x160xf32>
    %72 = arith.addf %67, %71 : vector<10x160xf32>
    %c2_56 = arith.constant 2 : index
    %c0_57 = arith.constant 0 : index
    %73 = vector.load %arg14[%c2_56, %c0_57] : memref<14x162xf32, #tpu.memory_space<vmem>>, vector<10x162xf32>
    %c2_58 = arith.constant 2 : index
    %c0_59 = arith.constant 0 : index
    %c0_60 = arith.constant 0 : index
    %74 = vector.load %arg4[%c2_58, %c0_59, %c0_60] : memref<5x162x160xf32, #tpu.memory_space<vmem>>, vector<1x162x160xf32>
    %75 = vector.shape_cast %74 : vector<1x162x160xf32> to vector<162x160xf32>
    %cst_61 = arith.constant dense<0.000000e+00> : vector<10x160xf32>
    %76 = tpu.matmul %73, %75, %cst_61 {dimension_numbers = #tpu.dot_dimension_numbers<[1], [0], [0], [1], [0, 0, 1, 1], [], []>} : vector<10x162xf32>, vector<162x160xf32>, vector<10x160xf32> -> vector<10x160xf32>
    %77 = arith.addf %72, %76 : vector<10x160xf32>
    %c3_62 = arith.constant 3 : index
    %c0_63 = arith.constant 0 : index
    %78 = vector.load %arg14[%c3_62, %c0_63] : memref<14x162xf32, #tpu.memory_space<vmem>>, vector<10x162xf32>
    %c3_64 = arith.constant 3 : index
    %c0_65 = arith.constant 0 : index
    %c0_66 = arith.constant 0 : index
    %79 = vector.load %arg4[%c3_64, %c0_65, %c0_66] : memref<5x162x160xf32, #tpu.memory_space<vmem>>, vector<1x162x160xf32>
    %80 = vector.shape_cast %79 : vector<1x162x160xf32> to vector<162x160xf32>
    %cst_67 = arith.constant dense<0.000000e+00> : vector<10x160xf32>
    %81 = tpu.matmul %78, %80, %cst_67 {dimension_numbers = #tpu.dot_dimension_numbers<[1], [0], [0], [1], [0, 0, 1, 1], [], []>} : vector<10x162xf32>, vector<162x160xf32>, vector<10x160xf32> -> vector<10x160xf32>
    %82 = arith.addf %77, %81 : vector<10x160xf32>
    %c4_68 = arith.constant 4 : index
    %c0_69 = arith.constant 0 : index
    %83 = vector.load %arg14[%c4_68, %c0_69] : memref<14x162xf32, #tpu.memory_space<vmem>>, vector<10x162xf32>
    %c4_70 = arith.constant 4 : index
    %c0_71 = arith.constant 0 : index
    %c0_72 = arith.constant 0 : index
    %84 = vector.load %arg4[%c4_70, %c0_71, %c0_72] : memref<5x162x160xf32, #tpu.memory_space<vmem>>, vector<1x162x160xf32>
    %85 = vector.shape_cast %84 : vector<1x162x160xf32> to vector<162x160xf32>
    %cst_73 = arith.constant dense<0.000000e+00> : vector<10x160xf32>
    %86 = tpu.matmul %83, %85, %cst_73 {dimension_numbers = #tpu.dot_dimension_numbers<[1], [0], [0], [1], [0, 0, 1, 1], [], []>} : vector<10x162xf32>, vector<162x160xf32>, vector<10x160xf32> -> vector<10x160xf32>
    %87 = arith.addf %82, %86 : vector<10x160xf32>
    %c0_74 = arith.constant 0 : index
    %c0_75 = arith.constant 0 : index
    %88 = vector.load %arg5[%c0_74, %c0_75] : memref<1x160xf32, #tpu.memory_space<vmem>>, vector<1x160xf32>
    %89 = vector.broadcast %88 : vector<1x160xf32> to vector<10x160xf32>
    %90 = arith.addf %87, %89 : vector<10x160xf32>
    %cst_76 = arith.constant 0.000000e+00 : f32
    %91 = vector.broadcast %cst_76 : f32 to vector<10x160xf32>
    %92 = arith.maximumf %90, %91 : vector<10x160xf32>
    %c0_77 = arith.constant 0 : index
    %c0_78 = arith.constant 0 : index
    %93 = vector.load %arg15[%c0_77, %c0_78] : memref<10x160xf32, #tpu.memory_space<vmem>>, vector<10x160xf32>
    tpu.vector_store %arg15[%c0_77, %c0_78], %92 {strides = array<i32>} : memref<10x160xf32, #tpu.memory_space<vmem>>, vector<10x160xf32>,
    %c0_79 = arith.constant 0 : index
    %c0_80 = arith.constant 0 : index
    %94 = vector.load %arg15[%c0_79, %c0_80] : memref<10x160xf32, #tpu.memory_space<vmem>>, vector<10x144xf32>
    %c0_81 = arith.constant 0 : index
    %c16 = arith.constant 16 : index
    %95 = vector.load %arg15[%c0_81, %c16] : memref<10x160xf32, #tpu.memory_space<vmem>>, vector<10x144xf32>
    %96 = arith.maximumf %94, %95 : vector<10x144xf32>
    %97 = tpu.iota {dimensions = array<i32: 0>} : vector<5x10xi32>
    %98 = tpu.iota {dimensions = array<i32: 1>} : vector<5x10xi32>
    %c2_i32_82 = arith.constant 2 : i32
    %99 = vector.broadcast %c2_i32_82 : i32 to vector<5x10xi32>
    %100 = arith.muli %99, %97 : vector<5x10xi32>
    %c0_i32_83 = arith.constant 0 : i32
    %101 = vector.broadcast %c0_i32_83 : i32 to vector<5x10xi32>
    %102 = arith.addi %100, %101 : vector<5x10xi32>
    %103 = arith.cmpi eq, %98, %102 : vector<5x10xi32>
    %104 = arith.extui %103 : vector<5x10xi1> to vector<5x10xi32>
    %105 = arith.sitofp %104 : vector<5x10xi32> to vector<5x10xf32>
    %106 = tpu.iota {dimensions = array<i32: 0>} : vector<5x10xi32>
    %107 = tpu.iota {dimensions = array<i32: 1>} : vector<5x10xi32>
    %c2_i32_84 = arith.constant 2 : i32
    %108 = vector.broadcast %c2_i32_84 : i32 to vector<5x10xi32>
    %109 = arith.muli %108, %106 : vector<5x10xi32>
    %c1_i32_85 = arith.constant 1 : i32
    %110 = vector.broadcast %c1_i32_85 : i32 to vector<5x10xi32>
    %111 = arith.addi %109, %110 : vector<5x10xi32>
    %112 = arith.cmpi eq, %107, %111 : vector<5x10xi32>
    %113 = arith.extui %112 : vector<5x10xi1> to vector<5x10xi32>
    %114 = arith.sitofp %113 : vector<5x10xi32> to vector<5x10xf32>
    %cst_86 = arith.constant dense<0.000000e+00> : vector<5x144xf32>
    %115 = tpu.matmul %105, %96, %cst_86 {dimension_numbers = #tpu.dot_dimension_numbers<[1], [0], [0], [1], [0, 0, 1, 1], [], []>} : vector<5x10xf32>, vector<10x144xf32>, vector<5x144xf32> -> vector<5x144xf32>
    %cst_87 = arith.constant dense<0.000000e+00> : vector<5x144xf32>
    %116 = tpu.matmul %114, %96, %cst_87 {dimension_numbers = #tpu.dot_dimension_numbers<[1], [0], [0], [1], [0, 0, 1, 1], [], []>} : vector<5x10xf32>, vector<10x144xf32>, vector<5x144xf32> -> vector<5x144xf32>
    %117 = arith.maximumf %115, %116 : vector<5x144xf32>
    %c0_88 = arith.constant 0 : index
    %c0_89 = arith.constant 0 : index
    %118 = vector.load %arg16[%c0_88, %c0_89] : memref<5x144xf32, #tpu.memory_space<vmem>>, vector<5x144xf32>
    tpu.vector_store %arg16[%c0_88, %c0_89], %117 {strides = array<i32>} : memref<5x144xf32, #tpu.memory_space<vmem>>, vector<5x144xf32>,
    %cst_90 = arith.constant 0.000000e+00 : f32
    %119 = vector.broadcast %cst_90 : f32 to vector<1x120xf32>
    %c0_91 = arith.constant 0 : index
    %c0_92 = arith.constant 0 : index
    %120 = vector.load %arg16[%c0_91, %c0_92] : memref<5x144xf32, #tpu.memory_space<vmem>>, vector<1x144xf32>
    %c0_93 = arith.constant 0 : index
    %c0_94 = arith.constant 0 : index
    %c0_95 = arith.constant 0 : index
    %121 = vector.load %arg6[%c0_93, %c0_94, %c0_95] : memref<5x144x120xf32, #tpu.memory_space<vmem>>, vector<1x144x120xf32>
    %122 = vector.shape_cast %121 : vector<1x144x120xf32> to vector<144x120xf32>
    %cst_96 = arith.constant dense<0.000000e+00> : vector<1x120xf32>
    %123 = tpu.matmul %120, %122, %cst_96 {dimension_numbers = #tpu.dot_dimension_numbers<[1], [0], [0], [1], [0, 0, 1, 1], [], []>} : vector<1x144xf32>, vector<144x120xf32>, vector<1x120xf32> -> vector<1x120xf32>
    %124 = arith.addf %119, %123 : vector<1x120xf32>
    %c1_97 = arith.constant 1 : index
    %c0_98 = arith.constant 0 : index
    %125 = vector.load %arg16[%c1_97, %c0_98] : memref<5x144xf32, #tpu.memory_space<vmem>>, vector<1x144xf32>
    %c1_99 = arith.constant 1 : index
    %c0_100 = arith.constant 0 : index
    %c0_101 = arith.constant 0 : index
    %126 = vector.load %arg6[%c1_99, %c0_100, %c0_101] : memref<5x144x120xf32, #tpu.memory_space<vmem>>, vector<1x144x120xf32>
    %127 = vector.shape_cast %126 : vector<1x144x120xf32> to vector<144x120xf32>
    %cst_102 = arith.constant dense<0.000000e+00> : vector<1x120xf32>
    %128 = tpu.matmul %125, %127, %cst_102 {dimension_numbers = #tpu.dot_dimension_numbers<[1], [0], [0], [1], [0, 0, 1, 1], [], []>} : vector<1x144xf32>, vector<144x120xf32>, vector<1x120xf32> -> vector<1x120xf32>
    %129 = arith.addf %124, %128 : vector<1x120xf32>
    %c2_103 = arith.constant 2 : index
    %c0_104 = arith.constant 0 : index
    %130 = vector.load %arg16[%c2_103, %c0_104] : memref<5x144xf32, #tpu.memory_space<vmem>>, vector<1x144xf32>
    %c2_105 = arith.constant 2 : index
    %c0_106 = arith.constant 0 : index
    %c0_107 = arith.constant 0 : index
    %131 = vector.load %arg6[%c2_105, %c0_106, %c0_107] : memref<5x144x120xf32, #tpu.memory_space<vmem>>, vector<1x144x120xf32>
    %132 = vector.shape_cast %131 : vector<1x144x120xf32> to vector<144x120xf32>
    %cst_108 = arith.constant dense<0.000000e+00> : vector<1x120xf32>
    %133 = tpu.matmul %130, %132, %cst_108 {dimension_numbers = #tpu.dot_dimension_numbers<[1], [0], [0], [1], [0, 0, 1, 1], [], []>} : vector<1x144xf32>, vector<144x120xf32>, vector<1x120xf32> -> vector<1x120xf32>
    %134 = arith.addf %129, %133 : vector<1x120xf32>
    %c3_109 = arith.constant 3 : index
    %c0_110 = arith.constant 0 : index
    %135 = vector.load %arg16[%c3_109, %c0_110] : memref<5x144xf32, #tpu.memory_space<vmem>>, vector<1x144xf32>
    %c3_111 = arith.constant 3 : index
    %c0_112 = arith.constant 0 : index
    %c0_113 = arith.constant 0 : index
    %136 = vector.load %arg6[%c3_111, %c0_112, %c0_113] : memref<5x144x120xf32, #tpu.memory_space<vmem>>, vector<1x144x120xf32>
    %137 = vector.shape_cast %136 : vector<1x144x120xf32> to vector<144x120xf32>
    %cst_114 = arith.constant dense<0.000000e+00> : vector<1x120xf32>
    %138 = tpu.matmul %135, %137, %cst_114 {dimension_numbers = #tpu.dot_dimension_numbers<[1], [0], [0], [1], [0, 0, 1, 1], [], []>} : vector<1x144xf32>, vector<144x120xf32>, vector<1x120xf32> -> vector<1x120xf32>
    %139 = arith.addf %134, %138 : vector<1x120xf32>
    %c4_115 = arith.constant 4 : index
    %c0_116 = arith.constant 0 : index
    %140 = vector.load %arg16[%c4_115, %c0_116] : memref<5x144xf32, #tpu.memory_space<vmem>>, vector<1x144xf32>
    %c4_117 = arith.constant 4 : index
    %c0_118 = arith.constant 0 : index
    %c0_119 = arith.constant 0 : index
    %141 = vector.load %arg6[%c4_117, %c0_118, %c0_119] : memref<5x144x120xf32, #tpu.memory_space<vmem>>, vector<1x144x120xf32>
    %142 = vector.shape_cast %141 : vector<1x144x120xf32> to vector<144x120xf32>
    %cst_120 = arith.constant dense<0.000000e+00> : vector<1x120xf32>
    %143 = tpu.matmul %140, %142, %cst_120 {dimension_numbers = #tpu.dot_dimension_numbers<[1], [0], [0], [1], [0, 0, 1, 1], [], []>} : vector<1x144xf32>, vector<144x120xf32>, vector<1x120xf32> -> vector<1x120xf32>
    %144 = arith.addf %139, %143 : vector<1x120xf32>
    %c0_121 = arith.constant 0 : index
    %c0_122 = arith.constant 0 : index
    %145 = vector.load %arg7[%c0_121, %c0_122] : memref<1x120xf32, #tpu.memory_space<vmem>>, vector<1x120xf32>
    %146 = arith.addf %144, %145 : vector<1x120xf32>
    %cst_123 = arith.constant 0.000000e+00 : f32
    %147 = vector.broadcast %cst_123 : f32 to vector<1x120xf32>
    %148 = arith.maximumf %146, %147 : vector<1x120xf32>
    %c0_124 = arith.constant 0 : index
    %c0_125 = arith.constant 0 : index
    %149 = vector.load %arg8[%c0_124, %c0_125] : memref<120x84xf32, #tpu.memory_space<vmem>>, vector<120x84xf32>
    %cst_126 = arith.constant dense<0.000000e+00> : vector<1x84xf32>
    %150 = tpu.matmul %148, %149, %cst_126 {dimension_numbers = #tpu.dot_dimension_numbers<[1], [0], [0], [1], [0, 0, 1, 1], [], []>} : vector<1x120xf32>, vector<120x84xf32>, vector<1x84xf32> -> vector<1x84xf32>
    %c0_127 = arith.constant 0 : index
    %c0_128 = arith.constant 0 : index
    %151 = vector.load %arg9[%c0_127, %c0_128] : memref<1x84xf32, #tpu.memory_space<vmem>>, vector<1x84xf32>
    %152 = arith.addf %150, %151 : vector<1x84xf32>
    %cst_129 = arith.constant 0.000000e+00 : f32
    %153 = vector.broadcast %cst_129 : f32 to vector<1x84xf32>
    %154 = arith.maximumf %152, %153 : vector<1x84xf32>
    %c0_130 = arith.constant 0 : index
    %c0_131 = arith.constant 0 : index
    %155 = vector.load %arg10[%c0_130, %c0_131] : memref<84x20xf32, #tpu.memory_space<vmem>>, vector<84x20xf32>
    %cst_132 = arith.constant dense<0.000000e+00> : vector<1x20xf32>
    %156 = tpu.matmul %154, %155, %cst_132 {dimension_numbers = #tpu.dot_dimension_numbers<[1], [0], [0], [1], [0, 0, 1, 1], [], []>} : vector<1x84xf32>, vector<84x20xf32>, vector<1x20xf32> -> vector<1x20xf32>
    %c0_133 = arith.constant 0 : index
    %c0_134 = arith.constant 0 : index
    %157 = vector.load %arg11[%c0_133, %c0_134] : memref<1x20xf32, #tpu.memory_space<vmem>>, vector<1x20xf32>
    %158 = arith.addf %156, %157 : vector<1x20xf32>
    %c0_135 = arith.constant 0 : index
    %c0_136 = arith.constant 0 : index
    %c0_137 = arith.constant 0 : index
    %159 = vector.load %arg12[%c0_135, %c0_136, %c0_137] : memref<1x1x20xf32, #tpu.memory_space<vmem>>, vector<1x1x20xf32>
    %160 = vector.shape_cast %159 : vector<1x1x20xf32> to vector<1x20xf32>
    %161 = vector.shape_cast %158 : vector<1x20xf32> to vector<1x1x20xf32>
    tpu.vector_store %arg12[%c0_135, %c0_136, %c0_137], %161 {strides = array<i32>} : memref<1x1x20xf32, #tpu.memory_space<vmem>>, vector<1x1x20xf32>,
    return
  }
  func.func @transform_0(%arg0: i32) -> (i32, i32, i32) {
    %c0_i32 = arith.constant 0 : i32
    %c0_i32_0 = arith.constant 0 : i32
    %c0_i32_1 = arith.constant 0 : i32
    return %arg0, %c0_i32, %c0_i32_0 : i32, i32, i32
  }
  func.func @transform_1(%arg0: i32) -> (i32, i32, i32) {
    %c0_i32 = arith.constant 0 : i32
    %c0_i32_0 = arith.constant 0 : i32
    %c0_i32_1 = arith.constant 0 : i32
    %c0_i32_2 = arith.constant 0 : i32
    return %c0_i32, %c0_i32_0, %c0_i32_1 : i32, i32, i32
  }
  func.func @transform_2(%arg0: i32) -> (i32, i32) {
    %c0_i32 = arith.constant 0 : i32
    %c0_i32_0 = arith.constant 0 : i32
    %c0_i32_1 = arith.constant 0 : i32
    return %c0_i32, %c0_i32_0 : i32, i32
  }
  func.func @transform_3(%arg0: i32) -> (i32, i32, i32) {
    %c0_i32 = arith.constant 0 : i32
    %c0_i32_0 = arith.constant 0 : i32
    %c0_i32_1 = arith.constant 0 : i32
    %c0_i32_2 = arith.constant 0 : i32
    return %c0_i32, %c0_i32_0, %c0_i32_1 : i32, i32, i32
  }
  func.func @transform_4(%arg0: i32) -> (i32, i32) {
    %c0_i32 = arith.constant 0 : i32
    %c0_i32_0 = arith.constant 0 : i32
    %c0_i32_1 = arith.constant 0 : i32
    return %c0_i32, %c0_i32_0 : i32, i32
  }
  func.func @transform_5(%arg0: i32) -> (i32, i32, i32) {
    %c0_i32 = arith.constant 0 : i32
    %c0_i32_0 = arith.constant 0 : i32
    %c0_i32_1 = arith.constant 0 : i32
    %c0_i32_2 = arith.constant 0 : i32
    return %c0_i32, %c0_i32_0, %c0_i32_1 : i32, i32, i32
  }
  func.func @transform_6(%arg0: i32) -> (i32, i32) {
    %c0_i32 = arith.constant 0 : i32
    %c0_i32_0 = arith.constant 0 : i32
    %c0_i32_1 = arith.constant 0 : i32
    return %c0_i32, %c0_i32_0 : i32, i32
  }
  func.func @transform_7(%arg0: i32) -> (i32, i32) {
    %c0_i32 = arith.constant 0 : i32
    %c0_i32_0 = arith.constant 0 : i32
    %c0_i32_1 = arith.constant 0 : i32
    return %c0_i32, %c0_i32_0 : i32, i32
  }
  func.func @transform_8(%arg0: i32) -> (i32, i32) {
    %c0_i32 = arith.constant 0 : i32
    %c0_i32_0 = arith.constant 0 : i32
    %c0_i32_1 = arith.constant 0 : i32
    return %c0_i32, %c0_i32_0 : i32, i32
  }
  func.func @transform_9(%arg0: i32) -> (i32, i32) {
    %c0_i32 = arith.constant 0 : i32
    %c0_i32_0 = arith.constant 0 : i32
    %c0_i32_1 = arith.constant 0 : i32
    return %c0_i32, %c0_i32_0 : i32, i32
  }
  func.func @transform_10(%arg0: i32) -> (i32, i32) {
    %c0_i32 = arith.constant 0 : i32
    %c0_i32_0 = arith.constant 0 : i32
    %c0_i32_1 = arith.constant 0 : i32
    return %c0_i32, %c0_i32_0 : i32, i32
  }
  func.func @transform_11(%arg0: i32) -> (i32, i32, i32) {
    %c0_i32 = arith.constant 0 : i32
    %c0_i32_0 = arith.constant 0 : i32
    %c0_i32_1 = arith.constant 0 : i32
    return %arg0, %c0_i32, %c0_i32_0 : i32, i32, i32
  }
}

</mosaic_0001>

<bundles_post_ra>
// kernel: forward.1
= control target key start
LH: loop header
LB: loop body
LE: loop exit
PB: predicated region body
PF: predicated region fallthrough
CT: control target
= control target key end

     0   :  { %16 = vsyncpa [#allocation7], 0  ;;  %s6050_s0 = inlined_call_operand.vmem [shape: f32[2,32,96], index: 0, kind: input, shape index: {}]   ;;  %s6051_s1 = inlined_call_operand.vmem [shape: f32[5,96,168], index: 1, kind: input, shape index: {}]   ;;  %s6052_s2 = inlined_call_operand.vmem [shape: f32[1,168], index: 2, kind: input, shape index: {}]   ;;  %s6053_s3 = inlined_call_operand.vmem [shape: f32[5,162,160], index: 3, kind: input, shape index: {}]   ;;  %s6054_s4 = inlined_call_operand.vmem [shape: f32[1,160], index: 4, kind: input, shape index: {}]   ;;  %s6055_s5 = inlined_call_operand.vmem [shape: f32[5,144,120], index: 5, kind: input, shape index: {}]   ;;  %s6056_s6 = inlined_call_operand.vmem [shape: f32[1,120], index: 6, kind: input, shape index: {}]   ;;  %s6057_s7 = inlined_call_operand.vmem [shape: f32[120,84], index: 7, kind: input, shape index: {}]   ;;  %s6058_s8 = inlined_call_operand.vmem [shape: f32[1,84], index: 8, kind: input, shape index: {}]   ;;  %s6059_s9 = inlined_call_operand.vmem [shape: f32[84,20], index: 9, kind: input, shape index: {}]   ;;  %s6060_s10 = inlined_call_operand.vmem [shape: f32[1,20], index: 10, kind: input, shape index: {}]   ;;  %s6061_s11 = inlined_call_operand.hbm [shape: f32[2,1,20], index: 11, kind: output, shape index: {}]  }
   0x1   :  { %18 = vsyncpa [#allocation7 + $0x1], 0  ;;  %s4345_s17 = smov 0   ;;  %s4347_s18 = smov 0  }
   0x2   :  { %s4349_s19 = smov 0   ;;  %s4351_s20 = smov 0  }
   0x3 LB: > { %6063 = sst [smem:[#allocation9_spill]] %s4272_s19  ;;  %s4366_s21 = sadd.s32 4294967295, %s4276_s20   ;;  %s4276_s20 = sphi %s4351_s20, %s6073_s20   ;;  %s4272_s19 = sphi %s4349_s19, %s6070_s19   ;;  %s4268_s18 = sphi %s4347_s18, %s6072_s18   ;;  %s4264_s17 = sphi %s4345_s17, %s6071_s17  }
   0x4   : > { %s3070_s22 = sadd.s32 4294967294, %s4276_s20   ;;  %s4370_s23 = sadd.s32 1, %s4276_s20  }
   0x5   : > { %s267_s24 = sadd.s32 1, %s4272_s19  ;;  %s264_s25 = ssub.s32 %s4276_s20, %s4370_s23 }
   0x6   : > { %p277_p0 = scmp.ne.s32.totalorder %s4272_s19, %s4268_s18  ;;  %p265_p1 = scmp.eq.s32.totalorder %s264_s25, 0 }
   0x7   : > { %p278_p2 = scmp.eq.s32.totalorder %s4366_s21, 1  ;;  %p283_p3 = scmp.ne.s32.totalorder %s4268_s18, %s4264_s17 }
   0x8   : > { %p284_p4 = scmp.eq.s32.totalorder %s3070_s22, 1  ;;  %p3073_p7 = scmp.ge.s32.totalorder %s4276_s20, 1 }
   0x9   : > { %s4381_s26 = scalar_select %p265_p1, %s4272_s19, %s267_s24  }
   0xa   : > { %p4383_p5 = por %p278_p2, %p277_p0  ;;  %p4387_p6 = por %p284_p4, %p283_p3 }
   0xb   : > { %6064 = sst [smem:[#allocation10_spill]] %s4381_s26  ;;  %p340_p8 = scmp.lt.s32.totalorder %s4276_s20, 3 }
   0xd   : > { %p341_p9 = pnand %p3073_p7, %p340_p8 }
   0xe   : > { %v3077_v0 = vld [vmem:[%s6051_s1 + $0xc8] sm:$0xff] (!%p341_p9)  ;;  %v3079_v1 = vld [vmem:[%s6051_s1 + $0xd8] sm:$0xff] (!%p341_p9)  ;;  %v3076_v2 = vld [vmem:[%s6051_s1 + $0xc0] sm:$0xff] (!%p341_p9)  ;;  %v4278_v7 = vmov (!%p341_p9), 0.0   ;;  %p379_p10 = scmp.lt.s32.totalorder (!%p341_p9), %s4366_s21, 1  ;;  %vm441_vm0 = vcmask (!%p341_p9), 785408  }
   0xf   : > { %344 = sbr.rel (%p341_p9) target bundleno = 2260 (0x8d4), region = 64  ;;  %v3568_v3 = vpack.c.bf16 (!%p341_p9), %v3079_v1, %v3077_v0  ;;  %v3078_v4 = vld [vmem:[%s6051_s1 + $0xd0] sm:$0xff] (!%p341_p9)  ;;  %v3081_v5 = vld [vmem:[%s6051_s1 + $0xe8] sm:$0xff] (!%p341_p9)  ;;  %v3083_v6 = vld [vmem:[%s6051_s1 + $0xf8] sm:$0xff] (!%p341_p9)  ;;  %518 = vmatprep.mubr.f32.mxu0 (!%p341_p9), %v4278_v7  ;;  %1248 = vmatprep.mubr.f32.mxu1 (!%p341_p9), %v4278_v7  ;;  %vm1087_vm1 = vcmask (!%p341_p9), 326656   ;;  %vm1094_vm2 = vcmask (!%p341_p9), 322560  }
  0x10   : > { %v3570_v8 = vpack.c.bf16 (!%p341_p9), %v3078_v4, %v3076_v2  ;;  %v3572_v9 = vpack.c.bf16 (!%p341_p9), %v3083_v6, %v3081_v5  ;;  %v3080_v10 = vld [vmem:[%s6051_s1 + $0xe0] sm:$0xff] (!%p341_p9)  ;;  %v3082_v11 = vld [vmem:[%s6051_s1 + $0xf0] sm:$0xff] (!%p341_p9)  ;;  %v3085_v12 = vld [vmem:[%s6051_s1 + $0x108] sm:$0xff] (!%p341_p9)  ;;  %vm1128_vm3 = vcmask (!%p341_p9), 998400   ;;  %vm1177_vm4 = vcmask (!%p341_p9), 1043456   ;;  %s4281_s26 = smov (!%p341_p9), 112  }
  0x11   : > { %3569 = vmatprep.subr.bf16.mxu0 (!%p341_p9), %v3568_v3  ;;  %v3087_v13 = vld [vmem:[%s6051_s1 + $0x118] sm:$0xff] (!%p341_p9)  ;;  %v3574_v14 = vpack.c.bf16 (!%p341_p9), %v3082_v11, %v3080_v10  ;;  %v3084_v16 = vld [vmem:[%s6051_s1 + $0x100] sm:$0xff] (!%p341_p9)  ;;  %v3086_v17 = vld [vmem:[%s6051_s1 + $0x110] sm:$0xff] (!%p341_p9)  ;;  %vm4280_vm5 = vmmov (!%p341_p9), 1   ;;  %vm1170_vm8 = vcmask (!%p341_p9), 228352   ;;  %vm1464_vm12 = vcmask (!%p341_p9), 1041408  }
  0x12   : > { %3571 = vmatpush1.bf16.msra.mxu0 (!%p341_p9), %v3570_v8  ;;  %v3576_v15 = vpack.c.bf16 (!%p341_p9), %v3087_v13, %v3085_v12  ;;  %v3089_v18 = vld [vmem:[%s6051_s1 + $0x128] sm:$0xff] (!%p341_p9)  ;;  %v3091_v19 = vld [vmem:[%s6051_s1 + $0x138] sm:$0xff] (!%p341_p9)  ;;  %v3578_v20 = vpack.c.bf16 (!%p341_p9), %v3086_v17, %v3084_v16  ;;  %v3088_v22 = vld [vmem:[%s6051_s1 + $0x120] sm:$0xff] (!%p341_p9)  ;;  %vm1349_vm13 = vcmask (!%p341_p9), 277504   ;;  %vm1352_vm14 = vcmask (!%p341_p9), 275456  }
  0x13   : > { %3573 = vmatprep.subr.bf16.mxu0 (!%p341_p9), %v3572_v9  ;;  %v3580_v21 = vpack.c.bf16 (!%p341_p9), %v3091_v19, %v3089_v18  ;;  %v3090_v23 = vld [vmem:[%s6051_s1 + $0x130] sm:$0xff] (!%p341_p9)  ;;  %v3093_v24 = vld [vmem:[%s6051_s1 + $0x148] sm:$0xff] (!%p341_p9)  ;;  %v3095_v25 = vld [vmem:[%s6051_s1 + $0x158] sm:$0xff] (!%p341_p9)  ;;  %vm1451_vm15 = vcmask (!%p341_p9), 1046528  }
  0x14   : > { %v3582_v26 = vpack.c.bf16 (!%p341_p9), %v3090_v23, %v3088_v22  ;;  %v3584_v27 = vpack.c.bf16 (!%p341_p9), %v3095_v25, %v3093_v24  ;;  %v3092_v28 = vld [vmem:[%s6051_s1 + $0x140] sm:$0xff] (!%p341_p9)  ;;  %v3094_v29 = vld [vmem:[%s6051_s1 + $0x150] sm:$0xff] (!%p341_p9)  ;;  %v3097_v30 = vld [vmem:[%s6051_s1 + $0x168] sm:$0xff] (!%p341_p9) }
  0x15   : > { %v3099_v31 = vld [vmem:[%s6051_s1 + $0x178] sm:$0xff] (!%p341_p9)  ;;  %v3586_v32 = vpack.c.bf16 (!%p341_p9), %v3094_v29, %v3092_v28  ;;  %v3096_v34 = vld [vmem:[%s6051_s1 + $0x160] sm:$0xff] (!%p341_p9)  ;;  %v3098_v35 = vld [vmem:[%s6051_s1 + $0x170] sm:$0xff] (!%p341_p9) }
  0x16   : > { %3575 = vmatpush1.bf16.msra.mxu0 %v3574_v14  ;;  %s380_s29 = scalar_select %p379_p10, %s4366_s21, 1  ;;  %v3588_v33 = vpack.c.bf16 %v3099_v31, %v3097_v30  ;;  %v389_v36 = vld [vmem:[%s6051_s1 + $0x8] sm:$0xff]  ;;  %v391_v37 = vld [vmem:[%s6051_s1 + $0x18] sm:$0xff]  ;;  %v3590_v38 = vpack.c.bf16 %v3098_v35, %v3096_v34  ;;  %v388_v40 = vld [vmem:[%s6051_s1] sm:$0xff] }
  0x17   : > { %3577 = vmatprep.subr.bf16.mxu0 %v3576_v15  ;;  %v3592_v39 = vpack.c.bf16 %v391_v37, %v389_v36  ;;  %v390_v41 = vld [vmem:[%s6051_s1 + $0x10] sm:$0xff]  ;;  %v393_v42 = vld [vmem:[%s6051_s1 + $0x28] sm:$0xff]  ;;  %v395_v43 = vld [vmem:[%s6051_s1 + $0x38] sm:$0xff] }
  0x18   : > { %s3481_s24 = sshll.u32 %s380_s29, 5  ;;  %v3594_v45 = vpack.c.bf16 %v390_v41, %v388_v40  ;;  %v3596_v46 = vpack.c.bf16 %v395_v43, %v393_v42  ;;  %v392_v47 = vld [vmem:[%s6051_s1 + $0x20] sm:$0xff]  ;;  %v394_v48 = vld [vmem:[%s6051_s1 + $0x30] sm:$0xff]  ;;  %v397_v49 = vld [vmem:[%s6051_s1 + $0x48] sm:$0xff] }
  0x19   : > { %s4478_s12 = scalar_lea.vmem %s6050_s0, %s3481_s24  ;;  %v399_v50 = vld [vmem:[%s6051_s1 + $0x58] sm:$0xff]  ;;  %v3598_v51 = vpack.c.bf16 %v394_v48, %v392_v47  ;;  %v396_v54 = vld [vmem:[%s6051_s1 + $0x40] sm:$0xff]  ;;  %v398_v55 = vld [vmem:[%s6051_s1 + $0x50] sm:$0xff] }
  0x1a   : > { %3579 = vmatpush1.bf16.msra.mxu0 %v3578_v20  ;;  %v412_v44 = vld [vmem:[%s4478_s12 + $0x1] sm:$0xff]  ;;  %v413_v52 = vld [vmem:[%s4478_s12 + $0x9] sm:$0xff]  ;;  %v3600_v53 = vpack.c.bf16 %v399_v50, %v397_v49  ;;  %v403_v57 = vld [vmem:[%s6051_s1 + $0x78] sm:$0xff]  ;;  %v3602_v58 = vpack.c.bf16 %v398_v55, %v396_v54 }
  0x1b   : > { %3581 = vmatprep.subr.bf16.mxu0 %v3580_v21  ;;  %v401_v56 = vld [vmem:[%s6051_s1 + $0x68] sm:$0xff]  ;;  %v414_v59 = vld [vmem:[%s4478_s12 + $0x11] sm:$0xff]  ;;  %v400_v61 = vld [vmem:[%s6051_s1 + $0x60] sm:$0xff] }
  0x1c   : > { %v3604_v60 = vpack.c.bf16 %v403_v57, %v401_v56  ;;  %v402_v62 = vld [vmem:[%s6051_s1 + $0x70] sm:$0xff]  ;;  %v405_v63 = vld [vmem:[%s6051_s1 + $0x88] sm:$0xff]  ;;  %v407_v0 = vld [vmem:[%s6051_s1 + $0x98] sm:$0xff] }
  0x1d   : > { %v3606_v1 = vpack.c.bf16 %v402_v62, %v400_v61  ;;  %v415_v2 = vld [vmem:[%s4478_s12 + $0x19] sm:$0xf]  ;;  %v3608_v3 = vpack.c.bf16 %v407_v0, %v405_v63  ;;  %v404_v4 = vld [vmem:[%s6051_s1 + $0x80] sm:$0xff]  ;;  %v406_v5 = vld [vmem:[%s6051_s1 + $0x90] sm:$0xff] }
  0x1e   : > { %3583 = vmatpush1.bf16.msra.mxu0 %v3582_v26  ;;  %v409_v6 = vld [vmem:[%s6051_s1 + $0xa8] sm:$0xff]  ;;  %v411_v8 = vld [vmem:[%s6051_s1 + $0xb8] sm:$0xff]  ;;  %v3610_v9 = vpack.c.bf16 %v406_v5, %v404_v4  ;;  %v408_v11 = vld [vmem:[%s6051_s1 + $0xa0] sm:$0xff] }
  0x1f   : > { %3585 = vmatprep.subr.bf16.mxu0 %v3584_v27  ;;  %v3612_v10 = vpack.c.bf16 %v411_v8, %v409_v6  ;;  %v410_v12 = vld [vmem:[%s6051_s1 + $0xb0] sm:$0xff]  ;;  %v3109_v13 = vld [vmem:[%s6051_s1 + $0x188] sm:$0xff]  ;;  %v3111_v14 = vld [vmem:[%s6051_s1 + $0x198] sm:$0xff] }
  0x20   : > { %v3614_v15 = vpack.c.bf16 %v410_v12, %v408_v11  ;;  %v3616_v16 = vpack.c.bf16 %v3111_v14, %v3109_v13  ;;  %v3108_v17 = vld [vmem:[%s6051_s1 + $0x180] sm:$0xff]  ;;  %v3110_v18 = vld [vmem:[%s6051_s1 + $0x190] sm:$0xff]  ;;  %v3113_v19 = vld [vmem:[%s6051_s1 + $0x1a8] sm:$0xff] }
  0x21   : > { %v3115_v20 = vld [vmem:[%s6051_s1 + $0x1b8] sm:$0xff]  ;;  %v384_v21 = vld [vmem:[%s4478_s12] sm:$0xff]  ;;  %v3618_v22 = vpack.c.bf16 %v3110_v18, %v3108_v17  ;;  %v3114_v25 = vld [vmem:[%s6051_s1 + $0x1b0] sm:$0xff] }
  0x22   : > { %3587 = vmatpush1.bf16.msra.mxu0 %v3586_v32  ;;  %v3620_v23 = vpack.c.bf16 %v3115_v20, %v3113_v19  ;;  %v3112_v24 = vld [vmem:[%s6051_s1 + $0x1a0] sm:$0xff]  ;;  %v3117_v26 = vld [vmem:[%s6051_s1 + $0x1c8] sm:$0xff]  ;;  %v3119_v27 = vld [vmem:[%s6051_s1 + $0x1d8] sm:$0xff] }
  0x23   : > { %3589 = vmatprep.subr.bf16.mxu0 %v3588_v33  ;;  %v3622_v28 = vpack.c.bf16 %v3114_v25, %v3112_v24  ;;  %v385_v29 = vld [vmem:[%s4478_s12 + $0x8] sm:$0xff]  ;;  %v3624_v30 = vpack.c.bf16 %v3119_v27, %v3117_v26  ;;  %v3116_v31 = vld [vmem:[%s6051_s1 + $0x1c0] sm:$0xff]  ;;  %v3118_v32 = vld [vmem:[%s6051_s1 + $0x1d0] sm:$0xff] }
  0x24   : > { %v3121_v33 = vld [vmem:[%s6051_s1 + $0x1e8] sm:$0xff]  ;;  %v3123_v34 = vld [vmem:[%s6051_s1 + $0x1f8] sm:$0xff]  ;;  %v3626_v35 = vpack.c.bf16 %v3118_v32, %v3116_v31  ;;  %v386_v36 = vld [vmem:[%s4478_s12 + $0x10] sm:$0xff] }
  0x25   : > { %v3628_v37 = vpack.c.bf16 %v3123_v34, %v3121_v33  ;;  %v3125_v40 = vld [vmem:[%s6051_s1 + $0x208] sm:$0xff]  ;;  %v3127_v41 = vld [vmem:[%s6051_s1 + $0x218] sm:$0xff]  ;;  %v3136_v57 = vld [vmem:[%s6051_s1 + $0x240] sm:$0xff] }
  0x26   : > { %3591 = vmatpush1.bf16.msra.mxu0 %v3590_v38  ;;  %v3120_v38 = vld [vmem:[%s6051_s1 + $0x1e0] sm:$0xff]  ;;  %v387_v43 = vld [vmem:[%s4478_s12 + $0x18] sm:$0xf]  ;;  %v3129_v47 = vld [vmem:[%s6051_s1 + $0x228] sm:$0xff] }
  0x27   : > { %3593 = vmatprep.subr.bf16.mxu0 %v3592_v39  ;;  %v3122_v39 = vld [vmem:[%s6051_s1 + $0x1f0] sm:$0xff]  ;;  %v3131_v48 = vld [vmem:[%s6051_s1 + $0x238] sm:$0xff]  ;;  %v644_v61 = vld [vmem:[%s4478_s12 + $0x2] sm:$0xff] }
  0x28   : > { %v3630_v42 = vpack.c.bf16 %v3122_v39, %v3120_v38  ;;  %v3636_v50 = vpack.c.bf16 %v3131_v48, %v3129_v47  ;;  %v3139_v54 = vld [vmem:[%s6051_s1 + $0x258] sm:$0xff]  ;;  %v3140_v0 = vld [vmem:[%s6051_s1 + $0x260] sm:$0xff]  ;;  %v645_v5 = vld [vmem:[%s4478_s12 + $0xa] sm:$0xff] }
  0x29   : > { %3100 = vmatmul.mubr.msk.f32.vlgmr.msra.gmra.mrb[0].mxu0 %vm441_vm0, %v412_v44  ;;  %v3632_v44 = vpack.c.bf16 %v3127_v41, %v3125_v40  ;;  %v3144_v8 = vld [vmem:[%s6051_s1 + $0x280] sm:$0xff]  ;;  %v3151_v11 = vld [vmem:[%s6051_s1 + $0x2b8] sm:$0xff]  ;;  %v3153_v17 = vld [vmem:[%s6051_s1 + $0x2c8] sm:$0xff] }
  0x2a   : > { %3595 = vmatpush1.bf16.msra.mxu0 %v3594_v45  ;;  %524 = vmatprep.mubr.f32.mxu0 %v4278_v7  ;;  %v3124_v45 = vld [vmem:[%s6051_s1 + $0x200] sm:$0xff]  ;;  %v646_v13 = vld [vmem:[%s4478_s12 + $0x12] sm:$0xff]  ;;  %v647_v20 = vld [vmem:[%s4478_s12 + $0x1a] sm:$0xf] }
  0x2b   : > { %3597 = vmatprep.subr.bf16.mxu0 %v3596_v46  ;;  %v3126_v46 = vld [vmem:[%s6051_s1 + $0x210] sm:$0xff]  ;;  %v3155_v18 = vld [vmem:[%s6051_s1 + $0x2d8] sm:$0xff]  ;;  %v3157_v24 = vld [vmem:[%s6051_s1 + $0x2e8] sm:$0xff] }
  0x2c   : > { %v3634_v49 = vpack.c.bf16 %v3126_v46, %v3124_v45  ;;  %v3159_v25 = vld [vmem:[%s6051_s1 + $0x2f8] sm:$0xff]  ;;  %v3164_v34 = vld [vmem:[%s6051_s1 + $0x300] sm:$0xff]  ;;  %v783_v46 = vld [vmem:[%s4478_s12 + $0xb] sm:$0xff] }
  0x2d   : > { %3101 = vmatmul.mubr.msk.f32.gmra.mrb[2].mxu0 %vm441_vm0, %v413_v52  ;;  %v3130_v52 = vld [vmem:[%s6051_s1 + $0x230] sm:$0xff]  ;;  %v3660_v27 = vpack.c.bf16 %v3159_v25, %v3157_v24  ;;  %v3167_v31 = vld [vmem:[%s6051_s1 + $0x318] sm:$0xff]  ;;  %v782_v38 = vld [vmem:[%s4478_s12 + $0x3] sm:$0xff] }
  0x2e   : > { %3599 = vmatpush1.bf16.msra.mxu0 %v3598_v51  ;;  %530 = vmatprep.mubr.f32.mxu0 %v4278_v7  ;;  %v3128_v51 = vld [vmem:[%s6051_s1 + $0x220] sm:$0xff]  ;;  %vm4848_vm6 = vmpackc.low %vm1177_vm4, %vm4280_vm5 }
  0x2f   : > { %3601 = vmatprep.subr.bf16.mxu0 %v3600_v53  ;;  %v3137_v53 = vld [vmem:[%s6051_s1 + $0x248] sm:$0xff]  ;;  %v3638_v55 = vpack.c.bf16 %v3130_v52, %v3128_v51  ;;  %v3168_v41 = vld [vmem:[%s6051_s1 + $0x320] sm:$0xff]  ;;  %v3179_v51 = vld [vmem:[%s6051_s1 + $0x378] sm:$0xff] }
  0x30   : > { %v3640_v56 = vpack.c.bf16 %v3139_v54, %v3137_v53  ;;  %v3172_v48 = vld [vmem:[%s6051_s1 + $0x340] sm:$0xff]  ;;  %v784_v53 = vld [vmem:[%s4478_s12 + $0x13] sm:$0xff] }
  0x31   : > { %3102 = vmatmul.mubr.msk.f32.gmra.mrb[4].mxu0 %vm441_vm0, %v414_v59  ;;  %v3141_v59 = vld [vmem:[%s6051_s1 + $0x268] sm:$0xff] }
  0x32   : > { %3603 = vmatpush1.bf16.msra.mxu0 %v3602_v58  ;;  %536 = vmatprep.mubr.f32.mxu0 %v4278_v7  ;;  %v3138_v58 = vld [vmem:[%s6051_s1 + $0x250] sm:$0xff] }
  0x33   : > { %3605 = vmatprep.subr.bf16.mxu0 %v3604_v60  ;;  %v3143_v60 = vld [vmem:[%s6051_s1 + $0x278] sm:$0xff]  ;;  %v3642_v62 = vpack.c.bf16 %v3138_v58, %v3136_v57  ;;  %v3181_v57 = vld [vmem:[%s6051_s1 + $0x388] sm:$0xff] }
  0x34   : > { %v3644_v63 = vpack.c.bf16 %v3143_v60, %v3141_v59  ;;  %v3183_v58 = vld [vmem:[%s6051_s1 + $0x398] sm:$0xff] }
  0x35   : > { %3103 = vmatmul.mubr.msk.f32.gmra.mrb[6].mxu0 %vm441_vm0, %v415_v2  ;;  %v3145_v2 = vld [vmem:[%s6051_s1 + $0x288] sm:$0xff]  ;;  %v785_v60 = vld [vmem:[%s4478_s12 + $0x1b] sm:$0xf] }
  0x36   : > { %3607 = vmatpush1.bf16.msra.mxu0 %v3606_v1  ;;  %619 = vmatprep.mubr.f32.mxu0 %v4278_v7  ;;  %v3142_v1 = vld [vmem:[%s6051_s1 + $0x270] sm:$0xff] }
  0x37   : > { %3609 = vmatprep.subr.bf16.mxu0 %v3608_v3  ;;  %v3147_v3 = vld [vmem:[%s6051_s1 + $0x298] sm:$0xff]  ;;  %v3646_v4 = vpack.c.bf16 %v3142_v1, %v3140_v0  ;;  %v3185_v0 = vld [vmem:[%s6051_s1 + $0x3a8] sm:$0xff] }
  0x38   : > { %v3648_v6 = vpack.c.bf16 %v3147_v3, %v3145_v2  ;;  %v3187_v1 = vld [vmem:[%s6051_s1 + $0x3b8] sm:$0xff] }
  0x39   : > { %v3684_v3 = vpack.c.bf16 %v3187_v1, %v3185_v0 }
  0x3a   : > { %3611 = vmatpush1.bf16.msra.mxu0 %v3610_v9  ;;  %v3146_v9 = vld [vmem:[%s6051_s1 + $0x290] sm:$0xff] }
  0x3b   : > { %3613 = vmatprep.subr.bf16.mxu0 %v3612_v10  ;;  %v3149_v10 = vld [vmem:[%s6051_s1 + $0x2a8] sm:$0xff]  ;;  %v3650_v12 = vpack.c.bf16 %v3146_v9, %v3144_v8 }
  0x3c   : > { %v3652_v14 = vpack.c.bf16 %v3151_v11, %v3149_v10  ;;  %v920_v8 = vld [vmem:[%s4478_s12 + $0x4] sm:$0xff]  ;;  %v921_v9 = vld [vmem:[%s4478_s12 + $0xc] sm:$0xff]  ;;  %v922_v10 = vld [vmem:[%s4478_s12 + $0x14] sm:$0xff] }
  0x3d   : > { %v923_v11 = vld [vmem:[%s4478_s12 + $0x1c] sm:$0xf]  ;;  %s4279_s12 = smov 122  }
  0x3e   : > { %3615 = vmatpush1.bf16.msra.mxu0 %v3614_v15  ;;  %v3148_v15 = vld [vmem:[%s6051_s1 + $0x2a0] sm:$0xff] }
  0x3f   : > { %3617 = vmatprep.subr.bf16.mxu0 %v3616_v16  ;;  %v3150_v16 = vld [vmem:[%s6051_s1 + $0x2b0] sm:$0xff] }
  0x40   : > { %v3654_v19 = vpack.c.bf16 %v3150_v16, %v3148_v15  ;;  %v1058_v15 = vld [vmem:[%s6052_s2] sm:$0x3] }
  0x41   : > { %3104 = vmatmul.mubr.msk.f32.vlgmr.msra.gmra.mrb[0].mxu0 %vm441_vm0, %v384_v21  ;;  %v3656_v21 = vpack.c.bf16 %v3155_v18, %v3153_v17 }
  0x42   : > { %3619 = vmatpush1.bf16.msra.mxu0 %v3618_v22  ;;  %625 = vmatprep.mubr.f32.mxu0 %v4278_v7  ;;  %v3152_v22 = vld [vmem:[%s6051_s1 + $0x2c0] sm:$0xff] }
  0x43   : > { %3621 = vmatprep.subr.bf16.mxu0 %v3620_v23  ;;  %v3154_v23 = vld [vmem:[%s6051_s1 + $0x2d0] sm:$0xff] }
  0x44   : > { %v3658_v26 = vpack.c.bf16 %v3154_v23, %v3152_v22 }
  0x45   : > { %3105 = vmatmul.mubr.msk.f32.gmra.mrb[2].mxu0 %vm441_vm0, %v385_v29  ;;  %v3158_v29 = vld [vmem:[%s6051_s1 + $0x2f0] sm:$0xff] }
  0x46   : > { %3623 = vmatpush1.bf16.msra.mxu0 %v3622_v28  ;;  %631 = vmatprep.mubr.f32.mxu0 %v4278_v7  ;;  %v3156_v28 = vld [vmem:[%s6051_s1 + $0x2e0] sm:$0xff] }
  0x47   : > { %3625 = vmatprep.subr.bf16.mxu0 %v3624_v30  ;;  %v3165_v30 = vld [vmem:[%s6051_s1 + $0x308] sm:$0xff]  ;;  %v3662_v32 = vpack.c.bf16 %v3158_v29, %v3156_v28 }
  0x48   : > { %v3664_v33 = vpack.c.bf16 %v3167_v31, %v3165_v30 }
  0x49   : > { %3106 = vmatmul.mubr.msk.f32.gmra.mrb[4].mxu0 %vm441_vm0, %v386_v36  ;;  %v3169_v36 = vld [vmem:[%s6051_s1 + $0x328] sm:$0xff] }
  0x4a   : > { %3627 = vmatpush1.bf16.msra.mxu0 %v3626_v35  ;;  %637 = vmatprep.mubr.f32.mxu0 %v4278_v7  ;;  %v3166_v35 = vld [vmem:[%s6051_s1 + $0x310] sm:$0xff] }
  0x4b   : > { %3629 = vmatprep.subr.bf16.mxu0 %v3628_v37  ;;  %v3171_v37 = vld [vmem:[%s6051_s1 + $0x338] sm:$0xff]  ;;  %v3666_v39 = vpack.c.bf16 %v3166_v35, %v3164_v34 }
  0x4c   : > { %v3668_v40 = vpack.c.bf16 %v3171_v37, %v3169_v36 }
  0x4d   : > { %3107 = vmatmul.mubr.msk.f32.gmra.mrb[6].mxu0 %vm441_vm0, %v387_v43  ;;  %v3173_v43 = vld [vmem:[%s6051_s1 + $0x348] sm:$0xff] }
  0x4e   : > { %3631 = vmatpush1.bf16.msra.mxu0 %v3630_v42  ;;  %749 = vmatprep.mubr.f32.mxu0 %v4278_v7  ;;  %v3170_v42 = vld [vmem:[%s6051_s1 + $0x330] sm:$0xff] }
  0x4f   : > { %3633 = vmatprep.subr.bf16.mxu0 %v3632_v44  ;;  %v3175_v44 = vld [vmem:[%s6051_s1 + $0x358] sm:$0xff]  ;;  %v3670_v45 = vpack.c.bf16 %v3170_v42, %v3168_v41 }
  0x50   : > { %v3672_v47 = vpack.c.bf16 %v3175_v44, %v3173_v43 }
  0x52   : > { %3635 = vmatpush1.bf16.msra.mxu0 %v3634_v49  ;;  %v3174_v49 = vld [vmem:[%s6051_s1 + $0x350] sm:$0xff] }
  0x53   : > { %3637 = vmatprep.subr.bf16.mxu0 %v3636_v50  ;;  %v3177_v50 = vld [vmem:[%s6051_s1 + $0x368] sm:$0xff]  ;;  %v3674_v52 = vpack.c.bf16 %v3174_v49, %v3172_v48 }
  0x54   : > { %v3676_v54 = vpack.c.bf16 %v3179_v51, %v3177_v50 }
  0x56   : > { %3639 = vmatpush1.bf16.msra.mxu0 %v3638_v55  ;;  %v3176_v55 = vld [vmem:[%s6051_s1 + $0x360] sm:$0xff] }
  0x57   : > { %3641 = vmatprep.subr.bf16.mxu0 %v3640_v56  ;;  %v3178_v56 = vld [vmem:[%s6051_s1 + $0x370] sm:$0xff] }
  0x58   : > { %v3678_v59 = vpack.c.bf16 %v3178_v56, %v3176_v55 }
  0x59   : > { %3132 = vmatmul.mubr.msk.f32.vlgmr.msra.gmra.mrb[0].mxu0 %vm441_vm0, %v644_v61  ;;  %v3680_v61 = vpack.c.bf16 %v3183_v58, %v3181_v57 }
  0x5a   : > { %3643 = vmatpush1.bf16.msra.mxu0 %v3642_v62  ;;  %755 = vmatprep.mubr.f32.mxu0 %v4278_v7  ;;  %v3180_v62 = vld [vmem:[%s6051_s1 + $0x380] sm:$0xff] }
  0x5b   : > { %3645 = vmatprep.subr.bf16.mxu0 %v3644_v63  ;;  %v3182_v63 = vld [vmem:[%s6051_s1 + $0x390] sm:$0xff] }
  0x5c   : > { %v3682_v2 = vpack.c.bf16 %v3182_v63, %v3180_v62 }
  0x5d   : > { %3133 = vmatmul.mubr.msk.f32.gmra.mrb[2].mxu0 %vm441_vm0, %v645_v5  ;;  %v3186_v5 = vld [vmem:[%s6051_s1 + $0x3b0] sm:$0xff] }
  0x5e   : > { %3647 = vmatpush1.bf16.msra.mxu0 %v3646_v4  ;;  %761 = vmatprep.mubr.f32.mxu0 %v4278_v7  ;;  %v3184_v4 = vld [vmem:[%s6051_s1 + $0x3a0] sm:$0xff] }
  0x5f   : > { %3649 = vmatprep.subr.bf16.mxu0 %v3648_v6  ;;  %v3686_v6 = vpack.c.bf16 %v3186_v5, %v3184_v4 }
  0x61   : > { %3134 = vmatmul.mubr.msk.f32.gmra.mrb[4].mxu0 %vm441_vm0, %v646_v13 }
  0x62   : > { %3651 = vmatpush1.bf16.msra.mxu0 %v3650_v12  ;;  %767 = vmatprep.mubr.f32.mxu0 %v4278_v7  ;;  %v1060_v12 = vlaneseq }
  0x63   : > { %3653 = vmatprep.subr.bf16.mxu0 %v3652_v14 }
  0x64   : > { %v4823_v13 = vshrl.u32 %v1060_v12, 7 }
  0x65   : > { %3135 = vmatmul.mubr.msk.f32.gmra.mrb[6].mxu0 %vm441_vm0, %v647_v20 }
  0x66   : > { %3655 = vmatpush1.bf16.msra.mxu0 %v3654_v19  ;;  %887 = vmatprep.mubr.f32.mxu0 %v4278_v7  ;;  %v4826_v14 = vsub.s32 0, %v4823_v13  ;;  %v4832_v16 = vsub.s32 1, %v4823_v13 }
  0x67   : > { %3657 = vmatprep.subr.bf16.mxu0 %v3656_v21 }
  0x68   : > { %v1063_v17 = vrot.slane %v1058_v15, %v4826_v14  ;;  %v1067_v18 = vrot.slane %v1058_v15, %v4832_v16  ;;  %v1151_v15 = vadd.s32 8, %v4823_v13 }
  0x6a   : > { %3659 = vmatpush1.bf16.msra.mxu0 %v3658_v26 }
  0x6b   : > { %3661 = vmatprep.subr.bf16.mxu0 %v3660_v27 }
  0x6e   : > { %3663 = vmatpush1.bf16.msra.mxu0 %v3662_v32 }
  0x6f   : > { %3665 = vmatprep.subr.bf16.mxu0 %v3664_v33 }
  0x71   : > { %3160 = vmatmul.mubr.msk.f32.vlgmr.msra.gmra.mrb[0].mxu0 %vm441_vm0, %v782_v38 }
  0x72   : > { %3667 = vmatpush1.bf16.msra.mxu0 %v3666_v39  ;;  %893 = vmatprep.mubr.f32.mxu0 %v4278_v7 }
  0x73   : > { %3669 = vmatprep.subr.bf16.mxu0 %v3668_v40 }
  0x75   : > { %3161 = vmatmul.mubr.msk.f32.gmra.mrb[2].mxu0 %vm441_vm0, %v783_v46 }
  0x76   : > { %3671 = vmatpush1.bf16.msra.mxu0 %v3670_v45  ;;  %899 = vmatprep.mubr.f32.mxu0 %v4278_v7 }
  0x77   : > { %3673 = vmatprep.subr.bf16.mxu0 %v3672_v47 }
  0x79   : > { %3162 = vmatmul.mubr.msk.f32.gmra.mrb[4].mxu0 %vm441_vm0, %v784_v53 }
  0x7a   : > { %3675 = vmatpush1.bf16.msra.mxu0 %v3674_v52  ;;  %905 = vmatprep.mubr.f32.mxu0 %v4278_v7 }
  0x7b   : > { %3677 = vmatprep.subr.bf16.mxu0 %v3676_v54 }
  0x7d   : > { %3163 = vmatmul.mubr.msk.f32.gmra.mrb[6].mxu0 %vm441_vm0, %v785_v60 }
  0x7e   : > { %3679 = vmatpush1.bf16.msra.mxu0 %v3678_v59  ;;  %1025 = vmatprep.mubr.f32.mxu0 %v4278_v7 }
  0x7f   : > { %3681 = vmatprep.subr.bf16.mxu0 %v3680_v61 }
  0x82   : > { %3683 = vmatpush1.bf16.msra.mxu0 %v3682_v2 }
  0x83   : > { %3685 = vmatprep.subr.bf16.mxu0 %v3684_v3 }
  0x86   : > { %3687 = vmatpush1.bf16.msra.mxu0 %v3686_v6  ;;  %v1153_v6 = vand.u32 127, %v1060_v12 }
  0x89   : > { %3188 = vmatmul.mubr.msk.f32.vlgmr.msra.gmra.mrb[0].mxu0 %vm441_vm0, %v920_v8  ;;  %v1154_v8 = vmul.u32 2, %v4823_v13 }
  0x8a   : > { %1031 = vmatprep.mubr.f32.mxu0 %v4278_v7 }
  0x8b   : > { %vm1156_vm7 = vcmp.eq.s32.totalorder %v1153_v6, %v1154_v8 }
  0x8c   : > { %v4857_v13 = vsel %vm1156_vm7, 1.0, %v4278_v7  ;;  %vm3909_vm7 = vmpackc.low %vm1464_vm12, %vm4280_vm5  ;;  %vm2142_vm5 = vcmask 80896  }
  0x8d   : > { %3189 = vmatmul.mubr.msk.f32.gmra.mrb[2].mxu0 %vm441_vm0, %v921_v9 }
  0x8e   : > { %1037 = vmatprep.mubr.f32.mxu0 %v4278_v7 }
  0x91   : > { %3190 = vmatmul.mubr.msk.f32.gmra.mrb[4].mxu0 %vm441_vm0, %v922_v10 }
  0x92   : > { %1043 = vmatprep.mubr.f32.mxu0 %v4278_v7 }
  0x95   : > { %3191 = vmatmul.mubr.msk.f32.gmra.mrb[6].mxu0 %vm441_vm0, %v923_v11  ;;  %vm1688_vm0 = vcmask 1045504  }
  0x96   : > { %2288 = vmatprep.mubr.f32.mxu0 %v4278_v7 }
 0x15c   : > { %v1027_v19 = vpop.f32.mrb[0].mxu0 }
 0x15d   : > { %v1070_v20 = vadd.f32 %v1063_v17, %v1027_v19  ;;  %v1029_v21 = vpop.f32.mrb[1].mxu0 }
 0x15e   : > { %v1071_v22 = vadd.f32 %v1067_v18, %v1029_v21 }
 0x15f   : > { %v1078_v23 = vmax.f32 %v1070_v20, 0.0 }
 0x160   : > { %v1079_v24 = vmax.f32 %v1071_v22, 0.0  ;;  %v1033_v25 = vpop.f32.mrb[2].mxu0  ;;  %v3236_v22 = vld [vmem:[%s6053_s3 + $0x250] sm:$0xff] }
 0x161   : > { %v1072_v26 = vadd.f32 %v1063_v17, %v1033_v25  ;;  %v1035_v27 = vpop.f32.mrb[3].mxu0  ;;  %v1162_v25 = vadd.s32 1, %v1154_v8 }
 0x162   : > { %1088 = vst.msk [vmem:[#allocation2 + $0x8] sm:$0xff] %vm1087_vm1, %v1079_v24  ;;  %v1073_v28 = vadd.f32 %v1067_v18, %v1035_v27  ;;  %v3207_v27 = vld [vmem:[%s6053_s3 + $0x168] sm:$0xff] }
 0x163   : > { %v1080_v29 = vmax.f32 %v1072_v26, 0.0  ;;  %v3205_v26 = vld [vmem:[%s6053_s3 + $0x158] sm:$0xff]  ;;  %vm1164_vm10 = vcmp.eq.s32.totalorder %v1153_v6, %v1162_v25  ;;  %v3243_v25 = vld [vmem:[%s6053_s3 + $0x288] sm:$0xff] }
 0x164   : > { %v1081_v30 = vmax.f32 %v1073_v28, 0.0  ;;  %v1039_v31 = vpop.f32.mrb[4].mxu0 }
 0x165   : > { %v1074_v32 = vadd.f32 %v1063_v17, %v1039_v31  ;;  %v1041_v33 = vpop.f32.mrb[5].mxu0  ;;  %v3204_v31 = vld [vmem:[%s6053_s3 + $0x150] sm:$0xff] }
 0x166   : > { %1090 = vst.msk [vmem:[#allocation2 + $0x18] sm:$0xff] %vm1087_vm1, %v1081_v30  ;;  %v1075_v34 = vadd.f32 %v1067_v18, %v1041_v33  ;;  %v3708_v30 = vpack.c.bf16 %v3207_v27, %v3205_v26  ;;  %v3209_v33 = vld [vmem:[%s6053_s3 + $0x178] sm:$0xff]  ;;  %v3240_v26 = vld [vmem:[%s6053_s3 + $0x270] sm:$0xff] }
 0x167   : > { %v1082_v35 = vmax.f32 %v1074_v32, 0.0  ;;  %v3206_v32 = vld [vmem:[%s6053_s3 + $0x160] sm:$0xff] }
 0x168   : > { %v1083_v36 = vmax.f32 %v1075_v34, 0.0  ;;  %v1045_v37 = vpop.f32.mrb[6].mxu0  ;;  %v3211_v34 = vld [vmem:[%s6053_s3 + $0x188] sm:$0xff] }
 0x169   : > { %v1076_v38 = vadd.f32 %v1063_v17, %v1045_v37  ;;  %v1047_v39 = vpop.f32.mrb[7].mxu0  ;;  %v1097_v40 = vld [vmem:[#allocation2 + $0x8] sm:$0xff]  ;;  %v3712_v37 = vpack.c.bf16 %v3211_v34, %v3209_v33  ;;  %v1361_v33 = vld [vmem:[%s6053_s3 + $0x18] sm:$0xff] }
 0x16a   : > { %1092 = vst.msk [vmem:[#allocation2 + $0x28] sm:$0xff] %vm1087_vm1, %v1083_v36  ;;  %v1077_v41 = vadd.f32 %v1067_v18, %v1047_v39  ;;  %v4184_v42 = vpack.i.bf16 %v1097_v40, %v1078_v23  ;;  %v3710_v36 = vpack.c.bf16 %v3206_v32, %v3204_v31  ;;  %v3210_v39 = vld [vmem:[%s6053_s3 + $0x180] sm:$0xff]  ;;  %v3244_v31 = vld [vmem:[%s6053_s3 + $0x290] sm:$0x3]  ;;  %v1359_v32 = vld [vmem:[%s6053_s3 + $0x8] sm:$0xff]  ;;  %vm1839_vm1 = vcmask 1044480  }
 0x16b   : > { %v1084_v43 = vmax.f32 %v1076_v38, 0.0  ;;  %v3208_v38 = vld [vmem:[%s6053_s3 + $0x170] sm:$0xff]  ;;  %v3748_v34 = vpack.c.bf16 %v1361_v33, %v1359_v32  ;;  %v1385_v32 = vld [vmem:[%s6053_s3 + $0xd8] sm:$0xff] }
 0x16c   : > { %v1085_v44 = vmax.f32 %v1077_v41, 0.0  ;;  %4185 = vrot.lane.b32.xlu0 %v4184_v42, %s4279_s12  ;;  %v3215_v41 = vld [vmem:[%s6053_s3 + $0x1a8] sm:$0xff] }
 0x16d   : > { %1093 = vst [vmem:[#allocation2 + $0x30] sm:$0xf] %v1084_v43  ;;  %v1099_v45 = vld [vmem:[#allocation2 + $0x18] sm:$0xff]  ;;  %v3714_v43 = vpack.c.bf16 %v3210_v39, %v3208_v38 }
 0x16e   : > { %1095 = vst.msk [vmem:[#allocation2 + $0x38] sm:$0xf] %vm1094_vm2, %v1085_v44  ;;  %v4189_v46 = vpack.i.bf16 %v1099_v45, %v1080_v29  ;;  %vm2110_vm2 = vcmask 261120  }
 0x170   : > { %4190 = vrot.lane.b32.xlu0 %v4189_v46, %s4279_s12  ;;  %v3214_v46 = vld [vmem:[%s6053_s3 + $0x1a0] sm:$0xff] }
 0x171   : > { %v1101_v47 = vld [vmem:[#allocation2 + $0x28] sm:$0xff] }
 0x172   : > { %v4194_v48 = vpack.i.bf16 %v1101_v47, %v1082_v35 }
 0x174   : > { %4195 = vrot.lane.b32.xlu1 %v4194_v48, %s4279_s12  ;;  %v1102_v49 = vld [vmem:[#allocation2 + $0x30] sm:$0xf]  ;;  %v3219_v48 = vld [vmem:[%s6053_s3 + $0x1c8] sm:$0xff] }
 0x175   : > { %v1103_v50 = vld [vmem:[#allocation2 + $0x38] sm:$0xf] }
 0x176   : > { %v4199_v51 = vpack.i.bf16 %v1103_v50, %v1102_v49 }
 0x178   : > { %4200 = vrot.lane.b32.xlu1 %v4199_v51, %s4279_s12  ;;  %v3216_v51 = vld [vmem:[%s6053_s3 + $0x1b0] sm:$0xff]  ;;  %s377_s12 = sand.u32 1, %s4268_s18  }
 0x179   : > { %s378_s29 = scalar_lea.vmem [#allocation6], %s377_s12  ;;  %s3003_s13 = scalar_lea.sflag [#allocation7], %s377_s12 }
 0x17a   : > { %s3015_s22 = sshll.u32 %s378_s29, 4  ;;  %s6010_s22 = int_to_ptr.vmem [resolvable:$true] %s3015_s22 }
 0x17b   : > { %s4214_s14 = scalar_lea.vmem %s6010_s22, 16 }
 0x17c   : > { %p4215_p11 = scmp.ne.s32.totalorder %s6010_s22, %s4214_s14 }
 0x17e   : > { %p4216_p12 = pnand %p4215_p11, %p4383_p5 }
 0x180   : > { %p4217_p13 = pneg %p4216_p12 }
 0x1de   : > { %v4186_v52 = vpop.permute.xlu0 %4185 }
 0x1df   : > { %v4188_v53 = vunpack.i.h.bf16 %v4186_v52  ;;  %v4187_v54 = vunpack.i.l.bf16 %v4186_v52  ;;  %v3218_v52 = vld [vmem:[%s6053_s3 + $0x1c0] sm:$0xff] }
 0x1e1   : > { %v1129_v58 = vsel %vm1128_vm3, %v4187_v54, %v4188_v53  ;;  %v1142_v59 = vmax.f32 %v1097_v40, %v4188_v53  ;;  %v3213_v40 = vld [vmem:[%s6053_s3 + $0x198] sm:$0xff]  ;;  %v3722_v53 = vpack.c.bf16 %v3218_v52, %v3216_v51  ;;  %v1360_v52 = vld [vmem:[%s6053_s3 + $0x10] sm:$0xff] }
 0x1e2   : > { %v4191_v55 = vpop.permute.xlu0 %4190  ;;  %v1141_v63 = vmax.f32 %v1078_v23, %v1129_v58  ;;  %v1155_v23 = vmul.u32 2, %v1151_v15  ;;  %v3716_v44 = vpack.c.bf16 %v3215_v41, %v3213_v40  ;;  %v3221_v54 = vld [vmem:[%s6053_s3 + $0x1d8] sm:$0xff]  ;;  %v3222_v58 = vld [vmem:[%s6053_s3 + $0x1e0] sm:$0xff]  ;;  %v3232_v15 = vld [vmem:[%s6053_s3 + $0x230] sm:$0xff] }
 0x1e3   : > { %v4193_v56 = vunpack.i.h.bf16 %v4191_v55  ;;  %v4192_v57 = vunpack.i.l.bf16 %v4191_v55  ;;  %v3223_v55 = vld [vmem:[%s6053_s3 + $0x1e8] sm:$0xff] }
 0x1e4   : > { %vm1157_vm9 = vcmp.eq.s32.totalorder %v1153_v6, %v1155_v23 }
 0x1e5   : > { %v1144_v60 = vmax.f32 %v1099_v45, %v4193_v56  ;;  %v1130_v61 = vsel %vm1128_vm3, %v4192_v57, %v4193_v56  ;;  %v3193_v28 = vsel %vm1157_vm9, 1.0, %v4278_v7  ;;  %v3212_v45 = vld [vmem:[%s6053_s3 + $0x190] sm:$0xff]  ;;  %v3724_v56 = vpack.c.bf16 %v3223_v55, %v3221_v54  ;;  %v1363_v55 = vld [vmem:[%s6053_s3 + $0x28] sm:$0xff] }
 0x1e6   : > { %v4196_v62 = vpop.permute.xlu1 %4195  ;;  %v1143_v0 = vmax.f32 %v1080_v29, %v1130_v61  ;;  %v1163_v29 = vadd.s32 1, %v1155_v23  ;;  %v3220_v57 = vld [vmem:[%s6053_s3 + $0x1d0] sm:$0xff]  ;;  %v3227_v61 = vld [vmem:[%s6053_s3 + $0x208] sm:$0xff]  ;;  %vm2350_vm9 = vcmask 130048  }
 0x1e7   : > { %v4198_v1 = vunpack.i.h.bf16 %v4196_v62  ;;  %v4197_v2 = vunpack.i.l.bf16 %v4196_v62  ;;  %v3688_v3 = vpack.c.bf16 %v1144_v60, %v1142_v59  ;;  %v3726_v59 = vpack.c.bf16 %v3222_v58, %v3220_v57  ;;  %v3225_v60 = vld [vmem:[%s6053_s3 + $0x1f8] sm:$0xff] }
 0x1e8   : > { %v3690_v4 = vpack.c.bf16 %v1143_v0, %v1141_v63  ;;  %vm1165_vm11 = vcmp.eq.s32.totalorder %v1153_v6, %v1163_v29  ;;  %v3728_v62 = vpack.c.bf16 %v3227_v61, %v3225_v60  ;;  %v3224_v63 = vld [vmem:[%s6053_s3 + $0x1f0] sm:$0xff]  ;;  %v3226_v0 = vld [vmem:[%s6053_s3 + $0x200] sm:$0xff] }
 0x1e9   : > { %3689 = vmatprep.subr.bf16.mxu1 %v3688_v3  ;;  %v1131_v9 = vsel %vm1128_vm3, %v4197_v2, %v4198_v1  ;;  %v1146_v17 = vmax.f32 %v1101_v47, %v4198_v1  ;;  %v3195_v42 = vsel %vm1165_vm11, 1.0, %v4278_v7  ;;  %v3217_v47 = vld [vmem:[%s6053_s3 + $0x1b8] sm:$0xff]  ;;  %v3730_v1 = vpack.c.bf16 %v3226_v0, %v3224_v63  ;;  %v3230_v6 = vld [vmem:[%s6053_s3 + $0x220] sm:$0xff]  ;;  %v1364_v0 = vld [vmem:[%s6053_s3 + $0x30] sm:$0xff] }
 0x1ea   : > { %3691 = vmatpush1.bf16.msra.mxu1 %v3690_v4  ;;  %v4201_v5 = vpop.permute.xlu1 %4200  ;;  %v1145_v20 = vmax.f32 %v1082_v35, %v1131_v9  ;;  %v4888_v35 = vsel %vm1164_vm10, 1.0, %v4278_v7  ;;  %v3229_v2 = vld [vmem:[%s6053_s3 + $0x218] sm:$0xff]  ;;  %v1362_v63 = vld [vmem:[%s6053_s3 + $0x20] sm:$0xff]  ;;  %vm4283_vm10 = vmmov 0   ;;  %vm2836_vm11 = vcmask 982016  }
 0x1eb   : > { %v4203_v10 = vunpack.i.h.bf16 %v4201_v5  ;;  %v4202_v11 = vunpack.i.l.bf16 %v4201_v5  ;;  %v3228_v5 = vld [vmem:[%s6053_s3 + $0x210] sm:$0xff]  ;;  %v3233_v9 = vld [vmem:[%s6053_s3 + $0x238] sm:$0xff] }
 0x1ec   : > { %v3734_v8 = vpack.c.bf16 %v3230_v6, %v3228_v5  ;;  %v1366_v6 = vld [vmem:[%s6053_s3 + $0x40] sm:$0xff] }
 0x1ed   : > { %v1148_v18 = vmax.f32 %v1103_v50, %v4203_v10  ;;  %v1132_v19 = vsel %vm1128_vm3, %v4202_v11, %v4203_v10  ;;  %v3720_v50 = vpack.c.bf16 %v3219_v48, %v3217_v47  ;;  %v3235_v10 = vld [vmem:[%s6053_s3 + $0x248] sm:$0xff]  ;;  %vm2113_vm3 = vcmask 254976  }
 0x1ee   : > { %v1147_v21 = vmax.f32 %v1102_v49, %v1132_v19  ;;  %v3718_v49 = vpack.c.bf16 %v3214_v46, %v3212_v45  ;;  %v3736_v11 = vpack.c.bf16 %v3235_v10, %v3233_v9  ;;  %v3237_v19 = vld [vmem:[%s6053_s3 + $0x258] sm:$0xff]  ;;  %v1371_v9 = vld [vmem:[%s6053_s3 + $0x68] sm:$0xff] }
 0x1ef   : > { %v3692_v12 = vpack.c.bf16 %v1148_v18, %v1146_v17  ;;  %v3234_v17 = vld [vmem:[%s6053_s3 + $0x240] sm:$0xff]  ;;  %v1373_v10 = vld [vmem:[%s6053_s3 + $0x78] sm:$0xff] }
 0x1f0   : > { %v3695_v24 = vpack.c.bf16 %v1147_v21, %v1145_v20  ;;  %v3738_v18 = vpack.c.bf16 %v3234_v17, %v3232_v15  ;;  %v3239_v20 = vld [vmem:[%s6053_s3 + $0x268] sm:$0xff]  ;;  %v3760_v17 = vpack.c.bf16 %v1373_v10, %v1371_v9 }
 0x1f1   : > { %3694 = vmatprep.subr.msk.bf16.mxu1 %vm4848_vm6, %v3692_v12  ;;  %v3740_v21 = vpack.c.bf16 %v3239_v20, %v3237_v19  ;;  %v1372_v19 = vld [vmem:[%s6053_s3 + $0x70] sm:$0xff]  ;;  %v1375_v20 = vld [vmem:[%s6053_s3 + $0x88] sm:$0xff] }
 0x1f2   : > { %3697 = vmatpush1.bf16.msk.msra.mxu1 %vm4848_vm6, %v3695_v24  ;;  %v3263_v10 = vld [vmem:[%s6053_s3 + $0x2e8] sm:$0xff] }
 0x1f3   : > { %3699 = vmatprep.subr.bf16.mxu1 %v3688_v3  ;;  %v3231_v3 = vld [vmem:[%s6053_s3 + $0x228] sm:$0xff] }
 0x1f5   : > { %3198 = vmatmul.mubr.msk.f32.vlgmr.msra.gmra.mrb[0].mxu1 %vm1170_vm8, %v4857_v13 }
 0x1f6   : > { %3701 = vmatpush1.bf16.msra.mxu1 %v3690_v4  ;;  %1254 = vmatprep.mubr.f32.mxu1 %v4278_v7  ;;  %v3732_v4 = vpack.c.bf16 %v3231_v3, %v3229_v2  ;;  %v1367_v2 = vld [vmem:[%s6053_s3 + $0x48] sm:$0xff]  ;;  %v1369_v3 = vld [vmem:[%s6053_s3 + $0x58] sm:$0xff] }
 0x1f7   : > { %3704 = vmatprep.subr.msk.bf16.mxu1 %vm4848_vm6, %v3692_v12  ;;  %v3238_v12 = vld [vmem:[%s6053_s3 + $0x260] sm:$0xff]  ;;  %v3756_v5 = vpack.c.bf16 %v1369_v3, %v1367_v2 }
 0x1f8   : > { %v3742_v23 = vpack.c.bf16 %v3238_v12, %v3236_v22 }
 0x1f9   : > { %3199 = vmatmul.mubr.msk.f32.gmra.mrb[2].mxu1 %vm1170_vm8, %v3193_v28  ;;  %v3242_v28 = vld [vmem:[%s6053_s3 + $0x280] sm:$0xff] }
 0x1fa   : > { %3707 = vmatpush1.bf16.msk.msra.mxu1 %vm4848_vm6, %v3695_v24  ;;  %1331 = vmatprep.mubr.f32.mxu1 %v4278_v7  ;;  %v3241_v24 = vld [vmem:[%s6053_s3 + $0x278] sm:$0xff]  ;;  %v3746_v29 = vpack.c.bf16 %v3242_v28, %v3240_v26  ;;  %vm2131_vm6 = vcmask 916480  }
 0x1fb   : > { %3709 = vmatprep.subr.bf16.mxu1 %v3708_v30  ;;  %v3744_v27 = vpack.c.bf16 %v3243_v25, %v3241_v24  ;;  %v3245_v30 = vld [vmem:[%s6053_s3 + $0x298] sm:$0x3]  ;;  %v1376_v24 = vld [vmem:[%s6053_s3 + $0x90] sm:$0xff]  ;;  %v1379_v25 = vld [vmem:[%s6053_s3 + $0xa8] sm:$0xff] }
 0x1fc   : > { %v1381_v26 = vld [vmem:[%s6053_s3 + $0xb8] sm:$0xff] }
 0x1fd   : > { %3202 = vmatmul.mubr.msk.f32.vlgmr.msra.gmra.mrb[4].mxu1 %vm1170_vm8, %v4888_v35  ;;  %v3768_v28 = vpack.c.bf16 %v1381_v26, %v1379_v25 }
 0x1fe   : > { %1337 = vmatprep.mubr.f32.mxu1 %v4278_v7  ;;  %3711 = vmatpush1.bf16.msra.mxu1 %v3710_v36 }
 0x1ff   : > { %3713 = vmatprep.subr.bf16.mxu1 %v3712_v37 }
 0x201   : > { %3203 = vmatmul.mubr.msk.f32.gmra.mrb[6].mxu1 %vm1170_vm8, %v3195_v42  ;;  %vm2298_vm8 = vcmask 126976  }
 0x202   : > { %3715 = vmatpush1.bf16.msra.mxu1 %v3714_v43 }
 0x203   : > { %3717 = vmatprep.subr.bf16.mxu1 %v3716_v44 }
 0x206   : > { %3719 = vmatpush1.bf16.msra.mxu1 %v3718_v49  ;;  %v1358_v49 = vld [vmem:[%s6053_s3] sm:$0xff] }
 0x207   : > { %3721 = vmatprep.subr.bf16.mxu1 %v3720_v50  ;;  %v3750_v60 = vpack.c.bf16 %v1360_v52, %v1358_v49  ;;  %v1390_v49 = vld [vmem:[%s6053_s3 + $0x100] sm:$0xff]  ;;  %v1397_v52 = vld [vmem:[%s6053_s3 + $0x138] sm:$0xff] }
 0x20a   : > { %3723 = vmatpush1.bf16.msra.mxu1 %v3722_v53 }
 0x20b   : > { %3725 = vmatprep.subr.bf16.mxu1 %v3724_v56  ;;  %v1365_v56 = vld [vmem:[%s6053_s3 + $0x38] sm:$0xff] }
 0x20e   : > { %3727 = vmatpush1.bf16.msra.mxu1 %v3726_v59 }
 0x20f   : > { %3729 = vmatprep.subr.bf16.mxu1 %v3728_v62  ;;  %v3752_v62 = vpack.c.bf16 %v1365_v56, %v1363_v55  ;;  %v1394_v55 = vld [vmem:[%s6053_s3 + $0x120] sm:$0xff]  ;;  %v1396_v56 = vld [vmem:[%s6053_s3 + $0x130] sm:$0xff] }
 0x212   : > { %3731 = vmatpush1.bf16.msra.mxu1 %v3730_v1 }
 0x213   : > { %3733 = vmatprep.subr.bf16.mxu1 %v3732_v4  ;;  %v3754_v4 = vpack.c.bf16 %v1364_v0, %v1362_v63  ;;  %v3259_v63 = vld [vmem:[%s6053_s3 + $0x2c8] sm:$0xff]  ;;  %v3261_v0 = vld [vmem:[%s6053_s3 + $0x2d8] sm:$0xff] }
 0x216   : > { %3735 = vmatpush1.bf16.msra.mxu1 %v3734_v8  ;;  %v1368_v8 = vld [vmem:[%s6053_s3 + $0x50] sm:$0xff] }
 0x217   : > { %3737 = vmatprep.subr.bf16.mxu1 %v3736_v11  ;;  %v3758_v15 = vpack.c.bf16 %v1368_v8, %v1366_v6  ;;  %v3258_v6 = vld [vmem:[%s6053_s3 + $0x2c0] sm:$0xff]  ;;  %v3260_v8 = vld [vmem:[%s6053_s3 + $0x2d0] sm:$0xff] }
 0x21a   : > { %3739 = vmatpush1.bf16.msra.mxu1 %v3738_v18  ;;  %v1370_v18 = vld [vmem:[%s6053_s3 + $0x60] sm:$0xff] }
 0x21b   : > { %3741 = vmatprep.subr.bf16.mxu1 %v3740_v21  ;;  %v1377_v21 = vld [vmem:[%s6053_s3 + $0x98] sm:$0xff]  ;;  %v3762_v22 = vpack.c.bf16 %v1372_v19, %v1370_v18  ;;  %v3794_v18 = vpack.c.bf16 %v3260_v8, %v3258_v6  ;;  %v3295_v6 = vld [vmem:[%s6053_s3 + $0x3e8] sm:$0x3] }
 0x21c   : > { %v3764_v12 = vpack.c.bf16 %v1377_v21, %v1375_v20  ;;  %v3262_v21 = vld [vmem:[%s6053_s3 + $0x2e0] sm:$0xff]  ;;  %v3301_v8 = vld [vmem:[%s6053_s3 + $0x3f8] sm:$0xff] }
 0x21e   : > { %3743 = vmatpush1.bf16.msra.mxu1 %v3742_v23  ;;  %v1374_v23 = vld [vmem:[%s6053_s3 + $0x80] sm:$0xff] }
 0x21f   : > { %3745 = vmatprep.subr.bf16.mxu1 %v3744_v27  ;;  %v3766_v27 = vpack.c.bf16 %v1376_v24, %v1374_v23  ;;  %v3269_v23 = vld [vmem:[%s6053_s3 + $0x318] sm:$0xff] }
 0x222   : > { %3747 = vmatpush1.bf16.msra.mxu1 %v3746_v29  ;;  %v1378_v29 = vld [vmem:[%s6053_s3 + $0xa0] sm:$0xff] }
 0x223   : > { %3246 = vmatprep.subr.msk.mxu1 %vm1464_vm12, %v3245_v30  ;;  %v1380_v30 = vld [vmem:[%s6053_s3 + $0xb0] sm:$0xff] }
 0x224   : > { %v3770_v33 = vpack.c.bf16 %v1380_v30, %v1378_v29  ;;  %v3271_v29 = vld [vmem:[%s6053_s3 + $0x328] sm:$0xff]  ;;  %v3273_v30 = vld [vmem:[%s6053_s3 + $0x338] sm:$0xff] }
 0x226   : > { %3247 = vmatpush1.msk.msra.mxu1 %vm1464_vm12, %v3244_v31  ;;  %v1383_v31 = vld [vmem:[%s6053_s3 + $0xc8] sm:$0xff] }
 0x227   : > { %3749 = vmatprep.subr.bf16.mxu1 %v3748_v34  ;;  %v3772_v34 = vpack.c.bf16 %v1385_v32, %v1383_v31  ;;  %v3804_v32 = vpack.c.bf16 %v3273_v30, %v3271_v29  ;;  %v3309_v29 = vld [vmem:[%s6053_s3 + $0x438] sm:$0xff]  ;;  %v3311_v30 = vld [vmem:[%s6053_s3 + $0x448] sm:$0xff] }
 0x2c8   : > { %v1250_v36 = vpop.f32.mrb[0].mxu1 }
 0x2c9   : > { %v1252_v37 = vpop.f32.mrb[1].mxu1 }
 0x2cc   : > { %v1256_v38 = vpop.f32.mrb[2].mxu1 }
 0x2cd   : > { %v1258_v39 = vpop.f32.mrb[3].mxu1 }
 0x2d0   : > { %v1333_v40 = vpop.f32.mrb[4].mxu1 }
 0x2d1   : > { %v5011_v41 = vmax.f32 %v1250_v36, %v1333_v40  ;;  %v1335_v42 = vpop.f32.mrb[5].mxu1  ;;  %v1382_v36 = vld [vmem:[%s6053_s3 + $0xc0] sm:$0xff] }
 0x2d2   : > { %v1345_v43 = vmax.f32 %v1252_v37, %v1335_v42  ;;  %v1384_v37 = vld [vmem:[%s6053_s3 + $0xd0] sm:$0xff] }
 0x2d3   : > { %1348 = vst [vmem:[#allocation3] sm:$0xff] %v5011_v41  ;;  %v3774_v40 = vpack.c.bf16 %v1384_v37, %v1382_v36  ;;  %v3275_v36 = vld [vmem:[%s6053_s3 + $0x348] sm:$0xff]  ;;  %v3277_v37 = vld [vmem:[%s6053_s3 + $0x358] sm:$0xff] }
 0x2d4   : > { %1350 = vst.msk [vmem:[#allocation3 + $0x8] sm:$0xff] %vm1349_vm13, %v1345_v43  ;;  %v1339_v44 = vpop.f32.mrb[6].mxu1  ;;  %v1386_v43 = vld [vmem:[%s6053_s3 + $0xe0] sm:$0xff] }
 0x2d5   : > { %v1346_v45 = vmax.f32 %v1256_v38, %v1339_v44  ;;  %v1341_v46 = vpop.f32.mrb[7].mxu1  ;;  %v1387_v38 = vld [vmem:[%s6053_s3 + $0xe8] sm:$0xff]  ;;  %v1388_v44 = vld [vmem:[%s6053_s3 + $0xf0] sm:$0xff] }
 0x2d6   : > { %v1347_v47 = vmax.f32 %v1258_v39, %v1341_v46  ;;  %v1389_v39 = vld [vmem:[%s6053_s3 + $0xf8] sm:$0xff] }
 0x2d7   : > { %1351 = vst [vmem:[#allocation3 + $0x10] sm:$0x3f] %v1346_v45  ;;  %v3776_v42 = vpack.c.bf16 %v1389_v39, %v1387_v38  ;;  %v1391_v45 = vld [vmem:[%s6053_s3 + $0x108] sm:$0xff]  ;;  %v1393_v46 = vld [vmem:[%s6053_s3 + $0x118] sm:$0xff]  ;;  %v3808_v39 = vpack.c.bf16 %v3277_v37, %v3275_v36  ;;  %v3308_v36 = vld [vmem:[%s6053_s3 + $0x430] sm:$0xff] }
 0x2d8   : > { %1353 = vst.msk [vmem:[#allocation3 + $0x18] sm:$0x3f] %vm1352_vm14, %v1347_v47  ;;  %v3778_v47 = vpack.c.bf16 %v1388_v44, %v1386_v43  ;;  %v3279_v43 = vld [vmem:[%s6053_s3 + $0x368] sm:$0xff]  ;;  %v3281_v44 = vld [vmem:[%s6053_s3 + $0x378] sm:$0xff]  ;;  %v3310_v37 = vld [vmem:[%s6053_s3 + $0x440] sm:$0xff] }
 0x2da   : > { %v1400_v50 = vld [vmem:[#allocation3] sm:$0xfe] }
 0x2db   : > { %v1401_v48 = vld [vmem:[#allocation3 + $0x8] sm:$0xfe]  ;;  %v1452_v59 = vrot.slane %v1400_v50, 1  ;;  %v1392_v50 = vld [vmem:[%s6053_s3 + $0x110] sm:$0xff] }
 0x2dc   : > { %v1455_v57 = vrot.slane %v1401_v48, 1  ;;  %v1355_v11 = vld [vmem:[#allocation3 + $0x8] sm:$0xff]  ;;  %v3780_v48 = vpack.c.bf16 %v1393_v46, %v1391_v45  ;;  %v3812_v46 = vpack.c.bf16 %v3281_v44, %v3279_v43  ;;  %v3314_v43 = vld [vmem:[%s6053_s3 + $0x460] sm:$0xff]  ;;  %v3317_v44 = vld [vmem:[%s6053_s3 + $0x478] sm:$0xff] }
 0x2dd   : > { %v1638_v9 = vld [vmem:[#allocation3 + $0x8] sm:$0xfc] }
 0x2de   : > { %v1402_v51 = vld [vmem:[#allocation3 + $0x10] sm:$0x7]  ;;  %v1692_v19 = vrot.slane %v1638_v9, 2  ;;  %v3303_v9 = vld [vmem:[%s6053_s3 + $0x408] sm:$0xff] }
 0x2df   : > { %v1403_v53 = vld [vmem:[#allocation3 + $0x18] sm:$0x7]  ;;  %v1453_v54 = vrot.slane %v1402_v51, 1  ;;  %v1395_v51 = vld [vmem:[%s6053_s3 + $0x128] sm:$0xff] }
 0x2e0   : > { %v1456_v58 = vrot.slane %v1403_v53, 1  ;;  %v3782_v53 = vpack.c.bf16 %v1392_v50, %v1390_v49  ;;  %v3283_v49 = vld [vmem:[%s6053_s3 + $0x388] sm:$0xff]  ;;  %v3285_v50 = vld [vmem:[%s6053_s3 + $0x398] sm:$0xff] }
 0x2e1   : > { %v1454_v1 = vsel %vm1451_vm15, %v1452_v59, %v1453_v54  ;;  %v3255_v59 = vld [vmem:[%s6053_s3 + $0x2a8] sm:$0xff] }
 0x2e2   : > { %v1457_v61 = vsel %vm1451_vm15, %v1455_v57, %v1456_v58  ;;  %v3786_v57 = vpack.c.bf16 %v1396_v56, %v1394_v55  ;;  %v3287_v55 = vld [vmem:[%s6053_s3 + $0x3a8] sm:$0xff]  ;;  %v3289_v56 = vld [vmem:[%s6053_s3 + $0x3b8] sm:$0xff] }
 0x2e3   : > { %3248 = vmatprep.mubr.msk.f32.mxu1 %vm1349_vm13, %v1457_v61  ;;  %v3254_v61 = vld [vmem:[%s6053_s3 + $0x2a0] sm:$0xff] }
 0x2e4   : > { %1536 = vmatmul.mubr.f32.vlgmr.msra.gmra.mrb[8].mxu1 %v1454_v1  ;;  %v1398_v1 = vld [vmem:[%s6053_s3 + $0x140] sm:$0x3] }
 0x2e5   : > { %3751 = vmatpush1.bf16.msra.mxu1 %v3750_v60  ;;  %3249 = vmatprep.mubr.msk.f32.mxu1 %vm1349_vm13, %v1456_v58  ;;  %v1399_v58 = vld [vmem:[%s6053_s3 + $0x148] sm:$0x3]  ;;  %v3257_v60 = vld [vmem:[%s6053_s3 + $0x2b8] sm:$0xff] }
 0x2e6   : > { %3753 = vmatprep.subr.bf16.mxu1 %v3752_v62  ;;  %v3256_v62 = vld [vmem:[%s6053_s3 + $0x2b0] sm:$0xff]  ;;  %v3788_v2 = vpack.c.bf16 %v3257_v60, %v3255_v59  ;;  %v3286_v59 = vld [vmem:[%s6053_s3 + $0x3a0] sm:$0xff] }
 0x2e7   : > { %v3790_v3 = vpack.c.bf16 %v3256_v62, %v3254_v61  ;;  %v3288_v60 = vld [vmem:[%s6053_s3 + $0x3b0] sm:$0xff]  ;;  %v3291_v61 = vld [vmem:[%s6053_s3 + $0x3c8] sm:$0xff]  ;;  %v3293_v62 = vld [vmem:[%s6053_s3 + $0x3d8] sm:$0xff] }
 0x2e8   : > { %1542 = vmatmul.mubr.f32.gmra.mrb[10].mxu1 %v1453_v54  ;;  %v3784_v54 = vpack.c.bf16 %v1397_v52, %v1395_v51  ;;  %v3816_v52 = vpack.c.bf16 %v3285_v50, %v3283_v49  ;;  %v3318_v49 = vld [vmem:[%s6053_s3 + $0x480] sm:$0xff]  ;;  %v3321_v50 = vld [vmem:[%s6053_s3 + $0x498] sm:$0xff] }
 0x2e9   : > { %3755 = vmatpush1.bf16.msra.mxu1 %v3754_v4  ;;  %3252 = vmatprep.mubr.msk.f32.mxu1 %vm1349_vm13, %v1355_v11  ;;  %v5157_v4 = vld [vmem:[#allocation3 + $0x18] sm:$0xf] }
 0x2ea   : > { %3757 = vmatprep.subr.bf16.mxu1 %v3756_v5  ;;  %v3792_v5 = vpack.c.bf16 %v3261_v0, %v3259_v63  ;;  %v3265_v11 = vld [vmem:[%s6053_s3 + $0x2f8] sm:$0xff]  ;;  %v3822_v63 = vpack.c.bf16 %v3288_v60, %v3286_v59  ;;  %v3824_v0 = vpack.c.bf16 %v3293_v62, %v3291_v61  ;;  %v3324_v60 = vld [vmem:[%s6053_s3 + $0x4b0] sm:$0xff]  ;;  %v3326_v61 = vld [vmem:[%s6053_s3 + $0x4c0] sm:$0xff] }
 0x2eb   : > { %v3796_v20 = vpack.c.bf16 %v3265_v11, %v3263_v10  ;;  %v1637_v10 = vld [vmem:[#allocation3] sm:$0xfc]  ;;  %v3300_v11 = vld [vmem:[%s6053_s3 + $0x3f0] sm:$0xff]  ;;  %v3329_v62 = vld [vmem:[%s6053_s3 + $0x4d8] sm:$0xff] }
 0x2ed   : > { %3759 = vmatpush1.bf16.msra.mxu1 %v3758_v15  ;;  %v1357_v15 = vld [vmem:[#allocation3 + $0x18] sm:$0x3] }
 0x2ee   : > { %3761 = vmatprep.subr.bf16.mxu1 %v3760_v17  ;;  %v1693_v17 = vrot.slane %v5157_v4, 2  ;;  %v3313_v4 = vld [vmem:[%s6053_s3 + $0x458] sm:$0xff] }
 0x2f0   : > { %v1694_v24 = vsel %vm1688_vm0, %v1692_v19, %v1693_v17  ;;  %v3305_v19 = vld [vmem:[%s6053_s3 + $0x418] sm:$0xff] }
 0x2f1   : > { %3763 = vmatpush1.bf16.msra.mxu1 %v3762_v22  ;;  %v1356_v22 = vld [vmem:[#allocation3 + $0x10] sm:$0x3] }
 0x2f2   : > { %3765 = vmatprep.subr.bf16.mxu1 %v3764_v12  ;;  %v3267_v12 = vld [vmem:[%s6053_s3 + $0x308] sm:$0xff] }
 0x2f3   : > { %v3800_v26 = vpack.c.bf16 %v3269_v23, %v3267_v12  ;;  %v5294_v23 = vld [vmem:[#allocation3 + $0x18] sm:$0x1f] }
 0x2f5   : > { %3767 = vmatpush1.bf16.msra.mxu1 %v3766_v27  ;;  %v3266_v27 = vld [vmem:[%s6053_s3 + $0x300] sm:$0xff] }
 0x2f6   : > { %3769 = vmatprep.subr.bf16.mxu1 %v3768_v28  ;;  %v3268_v28 = vld [vmem:[%s6053_s3 + $0x310] sm:$0xff] }
 0x2f7   : > { %v3802_v31 = vpack.c.bf16 %v3268_v28, %v3266_v27  ;;  %v1789_v28 = vld [vmem:[#allocation3 + $0x8] sm:$0xf8] }
 0x2f9   : > { %3771 = vmatpush1.bf16.msra.mxu1 %v3770_v33  ;;  %v3270_v33 = vld [vmem:[%s6053_s3 + $0x320] sm:$0xff] }
 0x2fa   : > { %3773 = vmatprep.subr.bf16.mxu1 %v3772_v34  ;;  %v3272_v34 = vld [vmem:[%s6053_s3 + $0x330] sm:$0xff] }
 0x2fb   : > { %v3806_v38 = vpack.c.bf16 %v3272_v34, %v3270_v33  ;;  %v1843_v33 = vrot.slane %v1789_v28, 3  ;;  %v3836_v34 = vpack.c.bf16 %v3311_v30, %v3309_v29  ;;  %v3346_v28 = vld [vmem:[%s6053_s3 + $0x540] sm:$0xff]  ;;  %v3348_v29 = vld [vmem:[%s6053_s3 + $0x550] sm:$0xff] }
 0x2fd   : > { %3775 = vmatpush1.bf16.msra.mxu1 %v3774_v40  ;;  %v3274_v40 = vld [vmem:[%s6053_s3 + $0x340] sm:$0xff] }
 0x2fe   : > { %3777 = vmatprep.subr.bf16.mxu1 %v3776_v42  ;;  %v3276_v42 = vld [vmem:[%s6053_s3 + $0x350] sm:$0xff] }
 0x2ff   : > { %v3810_v45 = vpack.c.bf16 %v3276_v42, %v3274_v40  ;;  %v3312_v42 = vld [vmem:[%s6053_s3 + $0x450] sm:$0xff] }
 0x301   : > { %3779 = vmatpush1.bf16.msra.mxu1 %v3778_v47  ;;  %v3278_v47 = vld [vmem:[%s6053_s3 + $0x360] sm:$0xff] }
 0x302   : > { %3781 = vmatprep.subr.bf16.mxu1 %v3780_v48  ;;  %v3280_v48 = vld [vmem:[%s6053_s3 + $0x370] sm:$0xff] }
 0x303   : > { %v3814_v51 = vpack.c.bf16 %v3280_v48, %v3278_v47  ;;  %v3316_v48 = vld [vmem:[%s6053_s3 + $0x470] sm:$0xff] }
 0x305   : > { %3783 = vmatpush1.bf16.msra.mxu1 %v3782_v53  ;;  %v3282_v53 = vld [vmem:[%s6053_s3 + $0x380] sm:$0xff] }
 0x306   : > { %3785 = vmatprep.subr.bf16.mxu1 %v3784_v54  ;;  %v3284_v54 = vld [vmem:[%s6053_s3 + $0x390] sm:$0xff] }
 0x309   : > { %3787 = vmatpush1.bf16.msra.mxu1 %v3786_v57  ;;  %v3818_v57 = vpack.c.bf16 %v3284_v54, %v3282_v53  ;;  %v3320_v54 = vld [vmem:[%s6053_s3 + $0x490] sm:$0xff] }
 0x30a   : > { %3250 = vmatprep.subr.msk.mxu1 %vm1464_vm12, %v1399_v58  ;;  %v3820_v58 = vpack.c.bf16 %v3289_v56, %v3287_v55  ;;  %v3322_v55 = vld [vmem:[%s6053_s3 + $0x4a0] sm:$0xff]  ;;  %v3325_v56 = vld [vmem:[%s6053_s3 + $0x4b8] sm:$0xff] }
 0x30d   : > { %3251 = vmatpush1.msk.msra.mxu1 %vm1464_vm12, %v1398_v1  ;;  %v3290_v1 = vld [vmem:[%s6053_s3 + $0x3c0] sm:$0xff] }
 0x30e   : > { %1625 = vmatmul.mubr.f32.vlgmr.msra.gmra.mrb[8].mxu1 %v5011_v41  ;;  %3789 = vmatprep.subr.bf16.mxu1 %v3788_v2  ;;  %v3264_v41 = vld [vmem:[%s6053_s3 + $0x2f0] sm:$0xff] }
 0x30f   : > { %3253 = vmatprep.mubr.msk.f32.mxu1 %vm1349_vm13, %v1357_v15  ;;  %3791 = vmatpush1.bf16.msra.mxu1 %v3790_v3  ;;  %v3798_v25 = vpack.c.bf16 %v3264_v41, %v3262_v21  ;;  %v3292_v2 = vld [vmem:[%s6053_s3 + $0x3d0] sm:$0xff]  ;;  %v3302_v15 = vld [vmem:[%s6053_s3 + $0x400] sm:$0xff]  ;;  %v3828_v41 = vpack.c.bf16 %v3303_v9, %v3301_v8 }
 0x310   : > { %3793 = vmatprep.subr.bf16.mxu1 %v3792_v5  ;;  %v3826_v3 = vpack.c.bf16 %v3292_v2, %v3290_v1  ;;  %v1639_v5 = vld [vmem:[#allocation3 + $0x10] sm:$0xf]  ;;  %v3294_v21 = vld [vmem:[%s6053_s3 + $0x3e0] sm:$0x3]  ;;  %v3830_v12 = vpack.c.bf16 %v3302_v15, %v3300_v11  ;;  %v3337_v15 = vld [vmem:[%s6053_s3 + $0x518] sm:$0xff] }
 0x311   : > { %v3328_v2 = vld [vmem:[%s6053_s3 + $0x4d0] sm:$0xff]  ;;  %v3334_v11 = vld [vmem:[%s6053_s3 + $0x500] sm:$0xff] }
 0x312   : > { %1631 = vmatmul.mubr.f32.gmra.mrb[10].mxu1 %v1356_v22  ;;  %v1689_v22 = vrot.slane %v1637_v10, 2  ;;  %v3332_v10 = vld [vmem:[%s6053_s3 + $0x4f0] sm:$0xff] }
 0x313   : > { %3795 = vmatpush1.bf16.msra.mxu1 %v3794_v18  ;;  %3298 = vmatprep.mubr.msk.f32.mxu1 %vm1349_vm13, %v1694_v24  ;;  %v1690_v18 = vrot.slane %v1639_v5, 2  ;;  %v3333_v5 = vld [vmem:[%s6053_s3 + $0x4f8] sm:$0xff] }
 0x314   : > { %3797 = vmatprep.subr.bf16.mxu1 %v3796_v20  ;;  %v3307_v20 = vld [vmem:[%s6053_s3 + $0x428] sm:$0xff] }
 0x315   : > { %v3832_v24 = vpack.c.bf16 %v3307_v20, %v3305_v19  ;;  %v1691_v27 = vsel %vm1688_vm0, %v1689_v22, %v1690_v18  ;;  %v3862_v19 = vpack.c.bf16 %v3334_v11, %v3332_v10  ;;  %v3370_v11 = vld [vmem:[%s6053_s3 + $0x600] sm:$0xff] }
 0x317   : > { %3799 = vmatpush1.bf16.msra.mxu1 %v3798_v25  ;;  %v3304_v25 = vld [vmem:[%s6053_s3 + $0x410] sm:$0xff] }
 0x318   : > { %3801 = vmatprep.subr.bf16.mxu1 %v3800_v26  ;;  %v3306_v26 = vld [vmem:[%s6053_s3 + $0x420] sm:$0xff] }
 0x31b   : > { %3803 = vmatpush1.bf16.msra.mxu1 %v3802_v31  ;;  %v1844_v31 = vrot.slane %v5294_v23, 3  ;;  %v3361_v23 = vld [vmem:[%s6053_s3 + $0x5b8] sm:$0xff] }
 0x31c   : > { %3805 = vmatprep.subr.bf16.mxu1 %v3804_v32  ;;  %v3834_v32 = vpack.c.bf16 %v3306_v26, %v3304_v25  ;;  %v3347_v25 = vld [vmem:[%s6053_s3 + $0x548] sm:$0xff]  ;;  %v3349_v26 = vld [vmem:[%s6053_s3 + $0x558] sm:$0xff] }
 0x31f   : > { %3807 = vmatpush1.bf16.msra.mxu1 %v3806_v38  ;;  %v1845_v38 = vsel %vm1839_vm1, %v1843_v33, %v1844_v31  ;;  %v3353_v33 = vld [vmem:[%s6053_s3 + $0x578] sm:$0xff] }
 0x320   : > { %3809 = vmatprep.subr.bf16.mxu1 %v3808_v39  ;;  %v3838_v39 = vpack.c.bf16 %v3310_v37, %v3308_v36  ;;  %v3868_v36 = vpack.c.bf16 %v3349_v26, %v3347_v25 }
 0x323   : > { %3811 = vmatpush1.bf16.msra.mxu1 %v3810_v45  ;;  %v3319_v45 = vld [vmem:[%s6053_s3 + $0x488] sm:$0xff] }
 0x324   : > { %3813 = vmatprep.subr.bf16.mxu1 %v3812_v46  ;;  %v3842_v46 = vpack.c.bf16 %v3314_v43, %v3312_v42  ;;  %v3844_v47 = vpack.c.bf16 %v3319_v45, %v3317_v44  ;;  %v1940_v43 = vld [vmem:[#allocation3 + $0x8] sm:$0xf0]  ;;  %v3357_v45 = vld [vmem:[%s6053_s3 + $0x598] sm:$0xff] }
 0x325   : > { %v3355_v44 = vld [vmem:[%s6053_s3 + $0x588] sm:$0xff] }
 0x327   : > { %3815 = vmatpush1.bf16.msra.mxu1 %v3814_v51  ;;  %v3323_v51 = vld [vmem:[%s6053_s3 + $0x4a8] sm:$0xff] }
 0x328   : > { %3817 = vmatprep.subr.bf16.mxu1 %v3816_v52  ;;  %v3846_v52 = vpack.c.bf16 %v3318_v49, %v3316_v48  ;;  %v3848_v53 = vpack.c.bf16 %v3323_v51, %v3321_v50  ;;  %v1993_v48 = vrot.slane %v1940_v43, 4  ;;  %v3876_v49 = vpack.c.bf16 %v3357_v45, %v3355_v44  ;;  %v3354_v50 = vld [vmem:[%s6053_s3 + $0x580] sm:$0xff]  ;;  %v3356_v51 = vld [vmem:[%s6053_s3 + $0x590] sm:$0xff] }
 0x329   : > { %v2089_v45 = vld [vmem:[%s6054_s4] sm:$0x3] }
 0x32b   : > { %3819 = vmatpush1.bf16.msra.mxu1 %v3818_v57  ;;  %v3327_v57 = vld [vmem:[%s6053_s3 + $0x4c8] sm:$0xff] }
 0x32c   : > { %3821 = vmatprep.subr.bf16.mxu1 %v3820_v58  ;;  %v3850_v58 = vpack.c.bf16 %v3322_v55, %v3320_v54  ;;  %v3852_v59 = vpack.c.bf16 %v3327_v57, %v3325_v56  ;;  %v3358_v55 = vld [vmem:[%s6053_s3 + $0x5a0] sm:$0xff]  ;;  %v3360_v56 = vld [vmem:[%s6053_s3 + $0x5b0] sm:$0xff]  ;;  %v3363_v57 = vld [vmem:[%s6053_s3 + $0x5c8] sm:$0xff] }
 0x32f   : > { %3823 = vmatpush1.bf16.msra.mxu1 %v3822_v63  ;;  %v3331_v63 = vld [vmem:[%s6053_s3 + $0x4e8] sm:$0xff] }
 0x330   : > { %3825 = vmatprep.subr.bf16.mxu1 %v3824_v0  ;;  %v3854_v0 = vpack.c.bf16 %v3326_v61, %v3324_v60  ;;  %v3856_v1 = vpack.c.bf16 %v3331_v63, %v3329_v62  ;;  %v3362_v61 = vld [vmem:[%s6053_s3 + $0x5c0] sm:$0xff]  ;;  %v3364_v62 = vld [vmem:[%s6053_s3 + $0x5d0] sm:$0xff]  ;;  %v3367_v63 = vld [vmem:[%s6053_s3 + $0x5e8] sm:$0xff] }
 0x333   : > { %3827 = vmatpush1.bf16.msra.mxu1 %v3826_v3  ;;  %v3330_v3 = vld [vmem:[%s6053_s3 + $0x4e0] sm:$0xff] }
 0x334   : > { %3296 = vmatprep.subr.msk.mxu1 %vm1464_vm12, %v3295_v6  ;;  %v3335_v6 = vld [vmem:[%s6053_s3 + $0x508] sm:$0xff]  ;;  %v3858_v8 = vpack.c.bf16 %v3330_v3, %v3328_v2  ;;  %v3366_v3 = vld [vmem:[%s6053_s3 + $0x5e0] sm:$0xff] }
 0x335   : > { %v3860_v9 = vpack.c.bf16 %v3335_v6, %v3333_v5  ;;  %v3368_v5 = vld [vmem:[%s6053_s3 + $0x5f0] sm:$0xff]  ;;  %v3371_v6 = vld [vmem:[%s6053_s3 + $0x608] sm:$0xff] }
 0x337   : > { %3297 = vmatpush1.msk.msra.mxu1 %vm1464_vm12, %v3294_v21  ;;  %v3336_v21 = vld [vmem:[%s6053_s3 + $0x510] sm:$0xff] }
 0x338   : > { %1772 = vmatmul.mubr.f32.vlgmr.msra.gmra.mrb[8].mxu1 %v1691_v27  ;;  %3829 = vmatprep.subr.bf16.mxu1 %v3828_v41  ;;  %v3338_v41 = vld [vmem:[%s6053_s3 + $0x520] sm:$0xff] }
 0x339   : > { %3299 = vmatprep.mubr.msk.f32.mxu1 %vm1349_vm13, %v1693_v17  ;;  %3831 = vmatpush1.bf16.msra.mxu1 %v3830_v12  ;;  %v3315_v17 = vld [vmem:[%s6053_s3 + $0x468] sm:$0xff]  ;;  %v3866_v22 = vpack.c.bf16 %v3338_v41, %v3336_v21  ;;  %v1790_v12 = vld [vmem:[#allocation3 + $0x10] sm:$0x1f]  ;;  %v1788_v27 = vld [vmem:[#allocation3] sm:$0xf8] }
 0x33a   : > { %3833 = vmatprep.subr.bf16.mxu1 %v3832_v24  ;;  %v3840_v40 = vpack.c.bf16 %v3315_v17, %v3313_v4  ;;  %v3341_v24 = vld [vmem:[%s6053_s3 + $0x538] sm:$0x3]  ;;  %v1841_v30 = vrot.slane %v1790_v12, 3  ;;  %v1840_v37 = vrot.slane %v1788_v27, 3  ;;  %v3870_v4 = vpack.c.bf16 %v3348_v29, %v3346_v28  ;;  %v3374_v41 = vld [vmem:[%s6053_s3 + $0x620] sm:$0xff]  ;;  %v3379_v12 = vld [vmem:[%s6053_s3 + $0x648] sm:$0xff] }
 0x33b   : > { %v5433_v17 = vld [vmem:[#allocation3 + $0x18] sm:$0x3f]  ;;  %v3378_v27 = vld [vmem:[%s6053_s3 + $0x640] sm:$0xff]  ;;  %v3380_v28 = vld [vmem:[%s6053_s3 + $0x650] sm:$0xff] }
 0x33c   : > { %1778 = vmatmul.mubr.f32.gmra.mrb[10].mxu1 %v1690_v18  ;;  %v3339_v18 = vld [vmem:[%s6053_s3 + $0x528] sm:$0xff]  ;;  %v1842_v42 = vsel %vm1839_vm1, %v1840_v37, %v1841_v30 }
 0x33d   : > { %3835 = vmatpush1.bf16.msra.mxu1 %v3834_v32  ;;  %3344 = vmatprep.mubr.msk.f32.mxu1 %vm1349_vm13, %v1845_v38  ;;  %v3864_v20 = vpack.c.bf16 %v3339_v18, %v3337_v15  ;;  %v3351_v32 = vld [vmem:[%s6053_s3 + $0x568] sm:$0xff]  ;;  %v3372_v15 = vld [vmem:[%s6053_s3 + $0x610] sm:$0xff] }
 0x33e   : > { %3837 = vmatprep.subr.bf16.mxu1 %v3836_v34  ;;  %v3340_v34 = vld [vmem:[%s6053_s3 + $0x530] sm:$0x3]  ;;  %v3872_v38 = vpack.c.bf16 %v3353_v33, %v3351_v32  ;;  %v3375_v18 = vld [vmem:[%s6053_s3 + $0x628] sm:$0xff]  ;;  %v3902_v32 = vpack.c.bf16 %v3380_v28, %v3378_v27  ;;  %v3439_v27 = vld [vmem:[%s6055_s5 + $0x1c0] sm:$0xff] }
 0x33f   : > { %v3383_v29 = vld [vmem:[%s6053_s3 + $0x668] sm:$0xff] }
 0x340   : > { %v3440_v28 = vld [vmem:[%s6055_s5 + $0x1c8] sm:$0xff] }
 0x341   : > { %3839 = vmatpush1.bf16.msra.mxu1 %v3838_v39  ;;  %v3350_v39 = vld [vmem:[%s6053_s3 + $0x560] sm:$0xff] }
 0x342   : > { %3841 = vmatprep.subr.bf16.mxu1 %v3840_v40  ;;  %v3352_v40 = vld [vmem:[%s6053_s3 + $0x570] sm:$0xff] }
 0x345   : > { %3843 = vmatpush1.bf16.msra.mxu1 %v3842_v46  ;;  %v1994_v46 = vrot.slane %v5433_v17, 4 }
 0x346   : > { %3845 = vmatprep.subr.bf16.mxu1 %v3844_v47  ;;  %v3874_v47 = vpack.c.bf16 %v3352_v40, %v3350_v39  ;;  %v1939_v39 = vld [vmem:[#allocation3] sm:$0xf0] }
 0x347   : > { %v1990_v43 = vrot.slane %v1939_v39, 4  ;;  %v3406_v39 = vld [vmem:[%s6055_s5 + $0xd0] sm:$0xff] }
 0x349   : > { %3847 = vmatpush1.bf16.msra.mxu1 %v3846_v52  ;;  %v3359_v52 = vld [vmem:[%s6053_s3 + $0x5a8] sm:$0xff] }
 0x34a   : > { %3849 = vmatprep.subr.bf16.mxu1 %v3848_v53  ;;  %v3878_v53 = vpack.c.bf16 %v3356_v51, %v3354_v50  ;;  %v3880_v54 = vpack.c.bf16 %v3361_v23, %v3359_v52 }
 0x34d   : > { %3851 = vmatpush1.bf16.msra.mxu1 %v3850_v58  ;;  %v3365_v58 = vld [vmem:[%s6053_s3 + $0x5d8] sm:$0xff] }
 0x34e   : > { %3853 = vmatprep.subr.bf16.mxu1 %v3852_v59  ;;  %v3882_v59 = vpack.c.bf16 %v3360_v56, %v3358_v55  ;;  %v3884_v60 = vpack.c.bf16 %v3365_v58, %v3363_v57 }
 0x351   : > { %3855 = vmatpush1.bf16.msra.mxu1 %v3854_v0  ;;  %v3369_v0 = vld [vmem:[%s6053_s3 + $0x5f8] sm:$0xff] }
 0x352   : > { %3857 = vmatprep.subr.bf16.mxu1 %v3856_v1  ;;  %v3886_v1 = vpack.c.bf16 %v3364_v62, %v3362_v61  ;;  %v3888_v2 = vpack.c.bf16 %v3369_v0, %v3367_v63 }
 0x355   : > { %3859 = vmatpush1.bf16.msra.mxu1 %v3858_v8  ;;  %v3373_v8 = vld [vmem:[%s6053_s3 + $0x618] sm:$0xff] }
 0x356   : > { %3861 = vmatprep.subr.bf16.mxu1 %v3860_v9  ;;  %v3890_v9 = vpack.c.bf16 %v3368_v5, %v3366_v3  ;;  %v3892_v10 = vpack.c.bf16 %v3373_v8, %v3371_v6 }
 0x359   : > { %3863 = vmatpush1.bf16.msra.mxu1 %v3862_v19  ;;  %v3377_v19 = vld [vmem:[%s6053_s3 + $0x638] sm:$0xff] }
 0x35a   : > { %3865 = vmatprep.subr.bf16.mxu1 %v3864_v20  ;;  %v3894_v20 = vpack.c.bf16 %v3372_v15, %v3370_v11  ;;  %v3896_v21 = vpack.c.bf16 %v3377_v19, %v3375_v18  ;;  %v3398_v15 = vld [vmem:[%s6055_s5 + $0x90] sm:$0xff]  ;;  %v3399_v19 = vld [vmem:[%s6055_s5 + $0x98] sm:$0xff] }
 0x35d   : > { %3867 = vmatpush1.bf16.msra.mxu1 %v3866_v22  ;;  %v3376_v22 = vld [vmem:[%s6053_s3 + $0x630] sm:$0xff] }
 0x35e   : > { %3342 = vmatprep.subr.msk.mxu1 %vm1464_vm12, %v3341_v24  ;;  %v3381_v24 = vld [vmem:[%s6053_s3 + $0x658] sm:$0xff]  ;;  %v3898_v25 = vpack.c.bf16 %v3376_v22, %v3374_v41  ;;  %v3921_v22 = vpack.c.bf16 %v3399_v19, %v3398_v15  ;;  %v2301_v19 = vld [vmem:[%s6055_s5] sm:$0xff] }
 0x35f   : > { %v3900_v26 = vpack.c.bf16 %v3381_v24, %v3379_v12  ;;  %v3400_v12 = vld [vmem:[%s6055_s5 + $0xa0] sm:$0xff] }
 0x361   : > { %3343 = vmatpush1.msk.msra.mxu1 %vm1464_vm12, %v3340_v34  ;;  %v3382_v34 = vld [vmem:[%s6053_s3 + $0x660] sm:$0xff] }
 0x362   : > { %1923 = vmatmul.mubr.f32.vlgmr.msra.gmra.mrb[8].mxu1 %v1842_v42  ;;  %3869 = vmatprep.subr.bf16.mxu1 %v3868_v36  ;;  %v3384_v36 = vld [vmem:[%s6053_s3 + $0x670] sm:$0xff]  ;;  %v3386_v42 = vld [vmem:[%s6053_s3 + $0x680] sm:$0x3] }
 0x363   : > { %3345 = vmatprep.mubr.msk.f32.mxu1 %vm1349_vm13, %v1844_v31  ;;  %3871 = vmatpush1.bf16.msra.mxu1 %v3870_v4  ;;  %v1995_v31 = vsel %vm1177_vm4, %v1993_v48, %v1994_v46  ;;  %v3906_v37 = vpack.c.bf16 %v3384_v36, %v3382_v34  ;;  %v1941_v4 = vld [vmem:[#allocation3 + $0x10] sm:$0x3f]  ;;  %v2098_v48 = vrot.slane %v2089_v45, %v4832_v16 }
 0x364   : > { %3873 = vmatprep.subr.bf16.mxu1 %v3872_v38  ;;  %v3387_v38 = vld [vmem:[%s6053_s3 + $0x688] sm:$0x3]  ;;  %v1991_v40 = vrot.slane %v1941_v4, 4 }
 0x365   : > { %v3405_v4 = vld [vmem:[%s6055_s5 + $0xc8] sm:$0xff] }
 0x366   : > { %1929 = vmatmul.mubr.f32.gmra.mrb[10].mxu1 %v1841_v30  ;;  %v3385_v30 = vld [vmem:[%s6053_s3 + $0x678] sm:$0xff]  ;;  %v1992_v44 = vsel %vm1177_vm4, %v1990_v43, %v1991_v40  ;;  %v3408_v43 = vld [vmem:[%s6055_s5 + $0xe0] sm:$0xff] }
 0x367   : > { %3875 = vmatpush1.bf16.msra.mxu1 %v3874_v47  ;;  %3390 = vmatprep.mubr.msk.f32.mxu1 %vm1349_vm13, %v1995_v31  ;;  %v3904_v33 = vpack.c.bf16 %v3385_v30, %v3383_v29  ;;  %v2094_v47 = vrot.slane %v2089_v45, %v4826_v14  ;;  %v3402_v30 = vld [vmem:[%s6055_s5 + $0xb0] sm:$0xff] }
 0x368   : > { %3877 = vmatprep.subr.bf16.mxu1 %v3876_v49 }
 0x36b   : > { %3879 = vmatpush1.bf16.msra.mxu1 %v3878_v53 }
 0x36c   : > { %3881 = vmatprep.subr.bf16.mxu1 %v3880_v54 }
 0x36f   : > { %3883 = vmatpush1.bf16.msra.mxu1 %v3882_v59 }
 0x370   : > { %3885 = vmatprep.subr.bf16.mxu1 %v3884_v60 }
 0x373   : > { %3887 = vmatpush1.bf16.msra.mxu1 %v3886_v1 }
 0x374   : > { %3889 = vmatprep.subr.bf16.mxu1 %v3888_v2 }
 0x377   : > { %3891 = vmatpush1.bf16.msra.mxu1 %v3890_v9 }
 0x378   : > { %3893 = vmatprep.subr.bf16.mxu1 %v3892_v10 }
 0x37b   : > { %3895 = vmatpush1.bf16.msra.mxu1 %v3894_v20  ;;  %v3437_v20 = vld [vmem:[%s6055_s5 + $0x1b0] sm:$0xff] }
 0x37c   : > { %3897 = vmatprep.subr.bf16.mxu1 %v3896_v21  ;;  %v3438_v21 = vld [vmem:[%s6055_s5 + $0x1b8] sm:$0xff] }
 0x37d   : > { %v4002_v24 = vpack.c.bf16 %v3438_v21, %v3437_v20  ;;  %v2302_v20 = vld [vmem:[%s6055_s5 + $0x8] sm:$0xff] }
 0x37f   : > { %3899 = vmatpush1.bf16.msra.mxu1 %v3898_v25  ;;  %v4282_v25 = vmov 0.0|0.0  }
 0x380   : > { %3901 = vmatprep.subr.bf16.mxu1 %v3900_v26  ;;  %v3401_v26 = vld [vmem:[%s6055_s5 + $0xa8] sm:$0xff] }
 0x381   : > { %v3924_v29 = vpack.c.bf16 %v3401_v26, %v3400_v12 }
 0x383   : > { %3903 = vmatpush1.bf16.msra.mxu1 %v3902_v32  ;;  %v4005_v32 = vpack.c.bf16 %v3440_v28, %v3439_v27 }
 0x384   : > { %3905 = vmatprep.subr.bf16.mxu1 %v3904_v33  ;;  %v3403_v33 = vld [vmem:[%s6055_s5 + $0xb8] sm:$0xff] }
 0x385   : > { %v3927_v34 = vpack.c.bf16 %v3403_v33, %v3402_v30  ;;  %v2304_v30 = vld [vmem:[%s6055_s5 + $0x18] sm:$0xff] }
 0x387   : > { %3907 = vmatpush1.bf16.msra.mxu1 %v3906_v37  ;;  %v3404_v37 = vld [vmem:[%s6055_s5 + $0xc0] sm:$0xff] }
 0x388   : > { %3388 = vmatprep.subr.msk.mxu1 %vm1464_vm12, %v3387_v38  ;;  %v3930_v38 = vpack.c.bf16 %v3405_v4, %v3404_v37  ;;  %v2308_v37 = vld [vmem:[%s6055_s5 + $0x38] sm:$0xff] }
 0x38b   : > { %3389 = vmatpush1.msk.msra.mxu1 %vm1464_vm12, %v3386_v42  ;;  %vm2923_vm12 = vcmask 687104  }
 0x38c   : > { %2073 = vmatmul.mubr.f32.vlgmr.msra.gmra.mrb[8].mxu1 %v1992_v44  ;;  %v3409_v44 = vld [vmem:[%s6055_s5 + $0xe8] sm:$0xff] }
 0x38d   : > { %3391 = vmatprep.mubr.msk.f32.mxu1 %vm1349_vm13, %v1994_v46  ;;  %v3936_v45 = vpack.c.bf16 %v3409_v44, %v3408_v43  ;;  %v2312_v43 = vld [vmem:[%s6055_s5 + $0x58] sm:$0xff] }
 0x390   : > { %2079 = vmatmul.mubr.f32.gmra.mrb[10].mxu1 %v1991_v40  ;;  %v3407_v40 = vld [vmem:[%s6055_s5 + $0xd8] sm:$0xff] }
 0x391   : > { %2215 = vmatprep.mubr.f32.mxu1 %v4278_v7  ;;  %v3933_v42 = vpack.c.bf16 %v3407_v40, %v3406_v39  ;;  %v2310_v39 = vld [vmem:[%s6055_s5 + $0x48] sm:$0xff] }
 0x45f   : > { %v2074_v49 = vpop.f32.mrb[8].mxu1 }
 0x460   : > { %v2101_v50 = vadd.f32 %v2094_v47, %v2074_v49  ;;  %v2076_v51 = vpop.f32.mrb[9].mxu1 }
 0x461   : > { %v2102_v52 = vadd.f32 %v2098_v48, %v2076_v51  ;;  %v3446_v51 = vld [vmem:[%s6055_s5 + $0x1f8] sm:$0xff] }
 0x462   : > { %v2105_v23 = vmax.f32 %v2101_v50, 0.0  ;;  %v3445_v50 = vld [vmem:[%s6055_s5 + $0x1f0] sm:$0xff] }
 0x463   : > { %v2106_v17 = vmax.f32 %v2102_v52, 0.0  ;;  %v2080_v31 = vpop.f32.mrb[10].mxu1  ;;  %v4014_v52 = vpack.c.bf16 %v3446_v51, %v3445_v50  ;;  %v2316_v50 = vld [vmem:[%s6055_s5 + $0x78] sm:$0xff] }
 0x464   : > { %v2103_v46 = vadd.f32 %v2094_v47, %v2080_v31  ;;  %v2082_v53 = vpop.f32.mrb[11].mxu1  ;;  %v3443_v47 = vld [vmem:[%s6055_s5 + $0x1e0] sm:$0xff] }
 0x465   : > { %2111 = vst.msk [vmem:[#allocation4 + $0x8] sm:$0xff] %vm2110_vm2, %v2106_v17  ;;  %v2104_v54 = vadd.f32 %v2098_v48, %v2082_v53  ;;  %v3444_v48 = vld [vmem:[%s6055_s5 + $0x1e8] sm:$0xff]  ;;  %v3411_v17 = vld [vmem:[%s6055_s5 + $0xf8] sm:$0xff]  ;;  %v3412_v31 = vld [vmem:[%s6055_s5 + $0x100] sm:$0xff] }
 0x466   : > { %v2107_v55 = vmax.f32 %v2103_v46, 0.0  ;;  %v4011_v49 = vpack.c.bf16 %v3444_v48, %v3443_v47  ;;  %v3413_v53 = vld [vmem:[%s6055_s5 + $0x108] sm:$0xff] }
 0x467   : > { %v2108_v56 = vmax.f32 %v2104_v54, 0.0  ;;  %v3447_v54 = vld [vmem:[%s6055_s5 + $0x200] sm:$0xff]  ;;  %v2314_v47 = vld [vmem:[%s6055_s5 + $0x68] sm:$0xff] }
 0x468   : > { %2112 = vst [vmem:[#allocation4 + $0x10] sm:$0x3] %v2107_v55  ;;  %v3448_v55 = vld [vmem:[%s6055_s5 + $0x208] sm:$0xff] }
 0x469   : > { %2114 = vst.msk [vmem:[#allocation4 + $0x18] sm:$0x3] %vm2113_vm3, %v2108_v56  ;;  %v4017_v56 = vpack.c.bf16 %v3448_v55, %v3447_v54 }
 0x46c   : > { %v2116_v57 = vld [vmem:[#allocation4 + $0x8] sm:$0xff] }
 0x46d   : > { %v4204_v58 = vpack.i.bf16 %v2116_v57, %v2105_v23 }
 0x46f   : > { %4205 = vrot.lane.b32.xlu0 %v4204_v58, %s4281_s26  ;;  %v2117_v59 = vld [vmem:[#allocation4 + $0x10] sm:$0x3] }
 0x470   : > { %v2118_v60 = vld [vmem:[#allocation4 + $0x18] sm:$0x3]  ;;  %v3414_v58 = vld [vmem:[%s6055_s5 + $0x110] sm:$0xff] }
 0x471   : > { %v4209_v61 = vpack.i.bf16 %v2118_v60, %v2117_v59 }
 0x473   : > { %4210 = vrot.lane.b32.xlu1 %v4209_v61, %s4281_s26  ;;  %v3450_v61 = vld [vmem:[%s6055_s5 + $0x218] sm:$0xff]  ;;  %s3478_s26 = sshll.u32 %s4366_s21, 4  ;;  %s4284_s21 = smov [#allocation6]  }
 0x474   : > { %s6008_s30 = scalar_lea.hbm %s6061_s11, %s3478_s26  ;;  %s4218_s15 = sshll.u32 %s4284_s21, 4  ;;  %s4219_s15 = int_to_ptr.vmem [resolvable:$false] %s4218_s15 }
 0x475   : > { %s4220_s19 = scalar_lea.vmem %s4219_s15, 32  ;;  %p4221_p0 = scmp.lt.s32.totalorder %s6010_s22, %s4219_s15 }
 0x476   : > { %p4222_p1 = scmp.lt.s32.totalorder %s4220_s19, %s4214_s14 }
 0x478   : > { %p4223_p2 = por %p4222_p1, %p4221_p0 }
 0x47a   : > { %p4224_p3 = pnand %p4223_p2, %p4217_p13 }
 0x4e1   : > { %v4206_v62 = vpop.permute.xlu0 %4205 }
 0x4e2   : > { %v4208_v63 = vunpack.i.h.bf16 %v4206_v62  ;;  %v4207_v0 = vunpack.i.l.bf16 %v4206_v62 }
 0x4e4   : > { %v2132_v2 = vsel %vm2131_vm6, %v4207_v0, %v4208_v63  ;;  %v2139_v6 = vmax.f32 %v2116_v57, %v4208_v63  ;;  %v3942_v57 = vpack.c.bf16 %v3413_v53, %v3412_v31  ;;  %v3451_v0 = vld [vmem:[%s6055_s5 + $0x220] sm:$0xff] }
 0x4e5   : > { %v4211_v1 = vpop.permute.xlu1 %4210  ;;  %v2138_v10 = vmax.f32 %v2105_v23, %v2132_v2  ;;  %v3410_v23 = vld [vmem:[%s6055_s5 + $0xf0] sm:$0xff]  ;;  %v3418_v31 = vld [vmem:[%s6055_s5 + $0x120] sm:$0xff] }
 0x4e6   : > { %v4213_v3 = vunpack.i.h.bf16 %v4211_v1  ;;  %v4212_v5 = vunpack.i.l.bf16 %v4211_v1  ;;  %v3939_v46 = vpack.c.bf16 %v3411_v17, %v3410_v23  ;;  %v3452_v1 = vld [vmem:[%s6055_s5 + $0x228] sm:$0xff] }
 0x4e7   : > { %v4023_v2 = vpack.c.bf16 %v3452_v1, %v3451_v0  ;;  %v2318_v23 = vld [vmem:[%s6055_s5 + $0x88] sm:$0xff]  ;;  %v3425_v0 = vld [vmem:[%s6055_s5 + $0x158] sm:$0xff] }
 0x4e8   : > { %v2141_v8 = vmax.f32 %v2118_v60, %v4213_v3  ;;  %v2133_v9 = vsel %vm2131_vm6, %v4212_v5, %v4213_v3  ;;  %v3449_v60 = vld [vmem:[%s6055_s5 + $0x210] sm:$0xff]  ;;  %v3454_v5 = vld [vmem:[%s6055_s5 + $0x238] sm:$0xff] }
 0x4e9   : > { %v2140_v11 = vmax.f32 %v2117_v59, %v2133_v9  ;;  %v3415_v59 = vld [vmem:[%s6055_s5 + $0x118] sm:$0xff]  ;;  %v4020_v63 = vpack.c.bf16 %v3450_v61, %v3449_v60  ;;  %v3453_v3 = vld [vmem:[%s6055_s5 + $0x230] sm:$0xff]  ;;  %v3422_v60 = vld [vmem:[%s6055_s5 + $0x140] sm:$0xff] }
 0x4ea   : > { %v3908_v18 = vpack.c.bf16 %v2141_v8, %v2139_v6  ;;  %v3945_v62 = vpack.c.bf16 %v3415_v59, %v3414_v58  ;;  %v4026_v6 = vpack.c.bf16 %v3454_v5, %v3453_v3  ;;  %v3423_v61 = vld [vmem:[%s6055_s5 + $0x148] sm:$0xff] }
 0x4eb   : > { %v3911_v41 = vpack.c.bf16 %v2140_v11, %v2138_v10  ;;  %v3427_v3 = vld [vmem:[%s6055_s5 + $0x168] sm:$0xff] }
 0x4ec   : > { %3910 = vmatprep.subr.msk.bf16.mxu1 %vm3909_vm7, %v3908_v18  ;;  %3916 = vmatprep.subr.msk.bf16.mxu0 %vm3909_vm7, %v3908_v18 }
 0x4ed   : > { %3913 = vmatpush1.bf16.msk.msra.mxu1 %vm3909_vm7, %v3911_v41  ;;  %3919 = vmatpush1.bf16.msk.msra.mxu0 %vm3909_vm7, %v3911_v41  ;;  %v3948_v41 = vpack.c.bf16 %v2302_v20, %v2301_v19  ;;  %v3433_v19 = vld [vmem:[%s6055_s5 + $0x198] sm:$0xff] }
 0x4ee   : > { %3920 = vmatprep.subr.bf16.mxu0 %v4282_v25  ;;  %4001 = vmatprep.subr.bf16.mxu1 %v4282_v25 }
 0x4f0   : > { %3394 = vmatmul.mubr.msk.f32.vlgmr.msra.gmra.mrb[12].mxu1 %vm2142_vm5, %v4857_v13  ;;  %3397 = vmatmul.mubr.msk.f32.vlgmr.msra.gmra.mrb[8].mxu0 %vm2142_vm5, %v4888_v35  ;;  %v3441_v13 = vld [vmem:[%s6055_s5 + $0x1d0] sm:$0xff]  ;;  %v3442_v35 = vld [vmem:[%s6055_s5 + $0x1d8] sm:$0xff] }
 0x4f1   : > { %3922 = vmatpush1.bf16.msra.mxu0 %v3921_v22  ;;  %4003 = vmatpush1.bf16.msra.mxu1 %v4002_v24  ;;  %v4008_v36 = vpack.c.bf16 %v3442_v35, %v3441_v13  ;;  %v2305_v13 = vld [vmem:[%s6055_s5 + $0x20] sm:$0xff]  ;;  %v2306_v35 = vld [vmem:[%s6055_s5 + $0x28] sm:$0xff] }
 0x4f2   : > { %3923 = vmatprep.subr.bf16.mxu0 %v4282_v25  ;;  %4004 = vmatprep.subr.bf16.mxu1 %v4282_v25 }
 0x4f5   : > { %3925 = vmatpush1.bf16.msra.mxu0 %v3924_v29  ;;  %4006 = vmatpush1.bf16.msra.mxu1 %v4005_v32  ;;  %v2303_v29 = vld [vmem:[%s6055_s5 + $0x10] sm:$0xff] }
 0x4f6   : > { %3926 = vmatprep.subr.bf16.mxu0 %v4282_v25  ;;  %4007 = vmatprep.subr.bf16.mxu1 %v4282_v25  ;;  %v3951_v33 = vpack.c.bf16 %v2304_v30, %v2303_v29  ;;  %v3458_v29 = vld [vmem:[%s6055_s5 + $0x250] sm:$0xff]  ;;  %v3459_v30 = vld [vmem:[%s6055_s5 + $0x258] sm:$0xff] }
 0x4f9   : > { %3928 = vmatpush1.bf16.msra.mxu0 %v3927_v34  ;;  %4009 = vmatpush1.bf16.msra.mxu1 %v4008_v36  ;;  %v3954_v34 = vpack.c.bf16 %v2306_v35, %v2305_v13  ;;  %v2307_v36 = vld [vmem:[%s6055_s5 + $0x30] sm:$0xff]  ;;  %v3460_v13 = vld [vmem:[%s6055_s5 + $0x260] sm:$0xff]  ;;  %v3461_v35 = vld [vmem:[%s6055_s5 + $0x268] sm:$0xff] }
 0x4fa   : > { %3929 = vmatprep.subr.bf16.mxu0 %v4282_v25  ;;  %4010 = vmatprep.subr.bf16.mxu1 %v4282_v25  ;;  %v3957_v4 = vpack.c.bf16 %v2308_v37, %v2307_v36  ;;  %v3463_v36 = vld [vmem:[%s6055_s5 + $0x278] sm:$0xff] }
 0x4fd   : > { %3931 = vmatpush1.bf16.msra.mxu0 %v3930_v38  ;;  %4012 = vmatpush1.bf16.msra.mxu1 %v4011_v49  ;;  %v2309_v38 = vld [vmem:[%s6055_s5 + $0x40] sm:$0xff]  ;;  %v2315_v49 = vld [vmem:[%s6055_s5 + $0x70] sm:$0xff] }
 0x4fe   : > { %3932 = vmatprep.subr.bf16.mxu0 %v4282_v25  ;;  %4013 = vmatprep.subr.bf16.mxu1 %v4282_v25  ;;  %v3960_v40 = vpack.c.bf16 %v2310_v39, %v2309_v38  ;;  %v3969_v51 = vpack.c.bf16 %v2316_v50, %v2315_v49  ;;  %v3465_v38 = vld [vmem:[%s6055_s5 + $0x288] sm:$0xff]  ;;  %v3471_v49 = vld [vmem:[%s6055_s5 + $0x2b8] sm:$0xff] }
 0x501   : > { %3934 = vmatpush1.bf16.msra.mxu0 %v3933_v42  ;;  %4015 = vmatpush1.bf16.msra.mxu1 %v4014_v52  ;;  %v2311_v42 = vld [vmem:[%s6055_s5 + $0x50] sm:$0xff]  ;;  %v2317_v52 = vld [vmem:[%s6055_s5 + $0x80] sm:$0xff] }
 0x502   : > { %3935 = vmatprep.subr.bf16.mxu0 %v4282_v25  ;;  %4016 = vmatprep.subr.bf16.mxu1 %v4282_v25  ;;  %v3963_v44 = vpack.c.bf16 %v2312_v43, %v2311_v42  ;;  %v3972_v17 = vpack.c.bf16 %v2318_v23, %v2317_v52  ;;  %v3467_v42 = vld [vmem:[%s6055_s5 + $0x298] sm:$0xff]  ;;  %v3473_v52 = vld [vmem:[%s6055_s5 + $0x2c8] sm:$0xff] }
 0x505   : > { %3937 = vmatpush1.bf16.msra.mxu0 %v3936_v45  ;;  %4018 = vmatpush1.bf16.msra.mxu1 %v4017_v56  ;;  %v2313_v45 = vld [vmem:[%s6055_s5 + $0x60] sm:$0xff]  ;;  %v3420_v56 = vld [vmem:[%s6055_s5 + $0x130] sm:$0xff] }
 0x506   : > { %3938 = vmatprep.subr.bf16.mxu0 %v4282_v25  ;;  %4019 = vmatprep.subr.bf16.mxu1 %v4282_v25  ;;  %v3966_v48 = vpack.c.bf16 %v2314_v47, %v2313_v45  ;;  %v3469_v45 = vld [vmem:[%s6055_s5 + $0x2a8] sm:$0xff] }
 0x509   : > { %3940 = vmatpush1.bf16.msra.mxu0 %v3939_v46  ;;  %4021 = vmatpush1.bf16.msra.mxu1 %v4020_v63  ;;  %v3419_v46 = vld [vmem:[%s6055_s5 + $0x128] sm:$0xff]  ;;  %v3424_v63 = vld [vmem:[%s6055_s5 + $0x150] sm:$0xff] }
 0x50a   : > { %3941 = vmatprep.subr.bf16.mxu0 %v4282_v25  ;;  %4022 = vmatprep.subr.bf16.mxu1 %v4282_v25  ;;  %v3975_v54 = vpack.c.bf16 %v3419_v46, %v3418_v31  ;;  %v3984_v1 = vpack.c.bf16 %v3425_v0, %v3424_v63  ;;  %v2820_v31 = vld [vmem:[%s6057_s7] sm:$0xff]  ;;  %v2821_v46 = vld [vmem:[%s6057_s7 + $0x8] sm:$0xff] }
 0x50b   : > { %v2829_v63 = vld [vmem:[%s6057_s7 + $0x48] sm:$0xff] }
 0x50d   : > { %3943 = vmatpush1.bf16.msra.mxu0 %v3942_v57  ;;  %4024 = vmatpush1.bf16.msra.mxu1 %v4023_v2  ;;  %v3421_v57 = vld [vmem:[%s6055_s5 + $0x138] sm:$0xff]  ;;  %v3426_v2 = vld [vmem:[%s6055_s5 + $0x160] sm:$0xff] }
 0x50e   : > { %3944 = vmatprep.subr.bf16.mxu0 %v4282_v25  ;;  %4025 = vmatprep.subr.bf16.mxu1 %v4282_v25  ;;  %v3978_v59 = vpack.c.bf16 %v3421_v57, %v3420_v56  ;;  %v3987_v5 = vpack.c.bf16 %v3427_v3, %v3426_v2  ;;  %v2824_v56 = vld [vmem:[%s6057_s7 + $0x20] sm:$0xff]  ;;  %v2825_v57 = vld [vmem:[%s6057_s7 + $0x28] sm:$0xff]  ;;  %v2831_v2 = vld [vmem:[%s6057_s7 + $0x58] sm:$0xff] }
 0x511   : > { %3946 = vmatpush1.bf16.msra.mxu0 %v3945_v62  ;;  %4027 = vmatpush1.bf16.msra.mxu1 %v4026_v6  ;;  %v3981_v62 = vpack.c.bf16 %v3423_v61, %v3422_v60  ;;  %v3428_v6 = vld [vmem:[%s6055_s5 + $0x170] sm:$0xff]  ;;  %v2827_v60 = vld [vmem:[%s6057_s7 + $0x38] sm:$0xff] }
 0x512   : > { %3947 = vmatprep.subr.bf16.mxu0 %v4282_v25  ;;  %4055 = vmatprep.subr.bf16.mxu1 %v4282_v25 }
 0x5c3   : > { %v2217_v8 = vpop.f32.mrb[12].mxu1  ;;  %v2290_v9 = vpop.f32.mrb[8].mxu0 }
 0x5c4   : > { %v2295_v10 = vmax.f32 %v2217_v8, %v2290_v9  ;;  %v2219_v11 = vpop.f32.mrb[13].mxu1  ;;  %v2292_v15 = vpop.f32.mrb[9].mxu0  ;;  %v3429_v8 = vld [vmem:[%s6055_s5 + $0x178] sm:$0xff] }
 0x5c5   : > { %v2296_v18 = vmax.f32 %v2219_v11, %v2292_v15  ;;  %v3990_v9 = vpack.c.bf16 %v3429_v8, %v3428_v6  ;;  %v3431_v11 = vld [vmem:[%s6055_s5 + $0x188] sm:$0xff] }
 0x5c6   : > { %2297 = vst [vmem:[#allocation5] sm:$0x1f] %v2295_v10  ;;  %v3430_v10 = vld [vmem:[%s6055_s5 + $0x180] sm:$0xff]  ;;  %v2833_v6 = vld [vmem:[%s6057_s7 + $0x68] sm:$0xff] }
 0x5c7   : > { %2299 = vst.msk [vmem:[#allocation5 + $0x8] sm:$0x1f] %vm2298_vm8, %v2296_v18  ;;  %v3993_v15 = vpack.c.bf16 %v3431_v11, %v3430_v10  ;;  %v3432_v18 = vld [vmem:[%s6055_s5 + $0x190] sm:$0xff]  ;;  %v2912_v10 = vld [vmem:[%s6059_s9 + $0x8] sm:$0xff] }
 0x5c8   : > { %v3996_v20 = vpack.c.bf16 %v3433_v19, %v3432_v18  ;;  %v2913_v11 = vld [vmem:[%s6059_s9 + $0x10] sm:$0xff]  ;;  %v2914_v18 = vld [vmem:[%s6059_s9 + $0x18] sm:$0xff] }
 0x5c9   : > { %v2834_v19 = vld [vmem:[%s6057_s7 + $0x70] sm:$0xff] }
 0x5ce   : > { %v2320_v21 = vld [vmem:[#allocation5 + $0x1] ss:$8 sm:$0x3]  ;;  %v2610_v22 = vld [vmem:[#allocation5 + $0x3] ss:$8 sm:$0x3] }
 0x5cf   : > { %v2348_v12 = vrot.slane %v2320_v21, %v4832_v16  ;;  %v2344_v24 = vrot.slane %v2320_v21, %v4826_v14  ;;  %v2638_v26 = vrot.slane %v2610_v22, %v4832_v16  ;;  %v2634_v27 = vrot.slane %v2610_v22, %v4826_v14  ;;  %v2300_v28 = vld [vmem:[#allocation5] ss:$8 sm:$0x3]  ;;  %v2506_v53 = vld [vmem:[#allocation5 + $0x2] ss:$8 sm:$0x3] }
 0x5d0   : > { %v2431_v32 = vrot.slane %v2300_v28, %v4832_v16  ;;  %v2427_v55 = vrot.slane %v2300_v28, %v4826_v14  ;;  %v2534_v58 = vrot.slane %v2506_v53, %v4832_v16  ;;  %v3434_v21 = vld [vmem:[%s6055_s5 + $0x1a0] sm:$0xff]  ;;  %v2530_v28 = vrot.slane %v2506_v53, %v4826_v14  ;;  %v2822_v53 = vld [vmem:[%s6057_s7 + $0x10] sm:$0xff] }
 0x5d1   : > { %3416 = vmatprep.mubr.msk.f32.mxu0 %vm2350_vm9, %v2348_v12  ;;  %3455 = vmatprep.mubr.msk.f32.mxu1 %vm2350_vm9, %v2638_v26  ;;  %v3456_v12 = vld [vmem:[%s6055_s5 + $0x240] sm:$0xff] }
 0x5d2   : > { %2418 = vmatmul.mubr.f32.vlgmr.msra.gmra.mrb[10].mxu0 %v2344_v24  ;;  %2707 = vmatmul.mubr.f32.vlgmr.msra.gmra.mrb[14].mxu1 %v2634_v27  ;;  %v3457_v24 = vld [vmem:[%s6055_s5 + $0x248] sm:$0xff] }
 0x5d3   : > { %3949 = vmatpush1.bf16.msra.mxu0 %v3948_v41  ;;  %3417 = vmatprep.mubr.msk.f32.mxu0 %vm2350_vm9, %v2431_v32  ;;  %v3435_v41 = vld [vmem:[%s6055_s5 + $0x1a8] sm:$0xff]  ;;  %v4029_v27 = vpack.c.bf16 %v3457_v24, %v3456_v12  ;;  %v2917_v12 = vld [vmem:[%s6059_s9 + $0x30] sm:$0xff]  ;;  %v2918_v24 = vld [vmem:[%s6059_s9 + $0x38] sm:$0xff] }
 0x5d4   : > { %3950 = vmatprep.subr.bf16.mxu0 %v4282_v25  ;;  %v3999_v22 = vpack.c.bf16 %v3435_v41, %v3434_v21  ;;  %v2714_v26 = vld [vmem:[#allocation5 + $0x4] ss:$8 sm:$0x3]  ;;  %3540 = vmatprep.mubr.msk.f32.mxu1 %vm4283_vm10, %v4278_v7 }
 0x5d5   : > { %v2742_v32 = vrot.slane %v2714_v26, %v4832_v16  ;;  %v3462_v16 = vld [vmem:[%s6055_s5 + $0x270] sm:$0xff]  ;;  %v2915_v21 = vld [vmem:[%s6059_s9 + $0x20] sm:$0xff]  ;;  %v2916_v41 = vld [vmem:[%s6059_s9 + $0x28] sm:$0xff] }
 0x5d6   : > { %v4038_v37 = vpack.c.bf16 %v3463_v36, %v3462_v16 }
 0x5d7   : > { %3952 = vmatpush1.bf16.msra.mxu0 %v3951_v33  ;;  %v4032_v33 = vpack.c.bf16 %v3459_v30, %v3458_v29 }
 0x5d8   : > { %3953 = vmatprep.subr.bf16.mxu0 %v4282_v25 }
 0x5db   : > { %3955 = vmatpush1.bf16.msra.mxu0 %v3954_v34  ;;  %v4035_v34 = vpack.c.bf16 %v3461_v35, %v3460_v13 }
 0x5dc   : > { %3956 = vmatprep.subr.bf16.mxu0 %v4282_v25 }
 0x5df   : > { %3958 = vmatpush1.bf16.msra.mxu0 %v3957_v4  ;;  %v3464_v4 = vld [vmem:[%s6055_s5 + $0x280] sm:$0xff] }
 0x5e0   : > { %3959 = vmatprep.subr.bf16.mxu0 %v4282_v25  ;;  %v4041_v39 = vpack.c.bf16 %v3465_v38, %v3464_v4  ;;  %v2817_v4 = vld [vmem:[%s6056_s6] sm:$0x1] }
 0x5e3   : > { %3961 = vmatpush1.bf16.msra.mxu0 %v3960_v40  ;;  %v3466_v40 = vld [vmem:[%s6055_s5 + $0x290] sm:$0xff] }
 0x5e4   : > { %3962 = vmatprep.subr.bf16.mxu0 %v4282_v25  ;;  %v4044_v43 = vpack.c.bf16 %v3467_v42, %v3466_v40 }
 0x5e7   : > { %3964 = vmatpush1.bf16.msra.mxu0 %v3963_v44  ;;  %v3468_v44 = vld [vmem:[%s6055_s5 + $0x2a0] sm:$0xff] }
 0x5e8   : > { %3965 = vmatprep.subr.bf16.mxu0 %v4282_v25  ;;  %v4047_v47 = vpack.c.bf16 %v3469_v45, %v3468_v44  ;;  %v2921_v45 = vld [vmem:[%s6059_s9 + $0x50] sm:$0xf] }
 0x5eb   : > { %3967 = vmatpush1.bf16.msra.mxu0 %v3966_v48  ;;  %v3470_v48 = vld [vmem:[%s6055_s5 + $0x2b0] sm:$0xff] }
 0x5ec   : > { %3968 = vmatprep.subr.bf16.mxu0 %v4282_v25  ;;  %v4050_v50 = vpack.c.bf16 %v3471_v49, %v3470_v48 }
 0x5ef   : > { %3970 = vmatpush1.bf16.msra.mxu0 %v3969_v51  ;;  %v3472_v51 = vld [vmem:[%s6055_s5 + $0x2c0] sm:$0xff] }
 0x5f0   : > { %3971 = vmatprep.subr.bf16.mxu0 %v4282_v25  ;;  %v4053_v23 = vpack.c.bf16 %v3473_v52, %v3472_v51 }
 0x5f3   : > { %3973 = vmatpush1.bf16.msra.mxu0 %v3972_v17  ;;  %v2738_v17 = vrot.slane %v2714_v26, %v4826_v14  ;;  %v2823_v14 = vld [vmem:[%s6057_s7 + $0x18] sm:$0xff]  ;;  %v4086_v26 = vpack.c.bf16 %v2918_v24, %v2917_v12 }
 0x5f4   : > { %3974 = vmatprep.subr.bf16.mxu0 %v4282_v25 }
 0x5f6   : > { %2500 = vmatmul.mubr.f32.vlgmr.msra.gmra.mrb[12].mxu0 %v2427_v55  ;;  %v4059_v55 = vpack.c.bf16 %v2823_v14, %v2822_v53 }
 0x5f7   : > { %3976 = vmatpush1.bf16.msra.mxu0 %v3975_v54  ;;  %3436 = vmatprep.mubr.msk.f32.mxu0 %vm2350_vm9, %v2534_v58  ;;  %v4056_v54 = vpack.c.bf16 %v2821_v46, %v2820_v31  ;;  %v4062_v58 = vpack.c.bf16 %v2825_v57, %v2824_v56 }
 0x5f8   : > { %3977 = vmatprep.subr.bf16.mxu0 %v4282_v25 }
 0x5f9   : > { %4057 = vmatpush3.bf16.msra.mxu1 %v4056_v54 }
 0x5fa   : > { %4058 = vmatprep.subr.bf16.mxu1 %v4282_v25 }
 0x5fb   : > { %3979 = vmatpush1.bf16.msra.mxu0 %v3978_v59  ;;  %v2826_v59 = vld [vmem:[%s6057_s7 + $0x30] sm:$0xff] }
 0x5fc   : > { %3980 = vmatprep.subr.bf16.mxu0 %v4282_v25  ;;  %v4065_v61 = vpack.c.bf16 %v2827_v60, %v2826_v59 }
 0x5fd   : > { %4060 = vmatpush3.bf16.msra.mxu1 %v4059_v55 }
 0x5fe   : > { %4061 = vmatprep.subr.bf16.mxu1 %v4282_v25 }
 0x5ff   : > { %3982 = vmatpush1.bf16.msra.mxu0 %v3981_v62  ;;  %v2828_v62 = vld [vmem:[%s6057_s7 + $0x40] sm:$0xff] }
 0x600   : > { %3983 = vmatprep.subr.bf16.mxu0 %v4282_v25  ;;  %v4068_v0 = vpack.c.bf16 %v2829_v63, %v2828_v62 }
 0x601   : > { %4063 = vmatpush3.bf16.msra.mxu1 %v4062_v58 }
 0x602   : > { %4064 = vmatprep.subr.bf16.mxu1 %v4282_v25 }
 0x603   : > { %3985 = vmatpush1.bf16.msra.mxu0 %v3984_v1  ;;  %v2830_v1 = vld [vmem:[%s6057_s7 + $0x50] sm:$0xff] }
 0x604   : > { %3986 = vmatprep.subr.bf16.mxu0 %v4282_v25  ;;  %v4071_v3 = vpack.c.bf16 %v2831_v2, %v2830_v1 }
 0x605   : > { %4066 = vmatpush3.bf16.msra.mxu1 %v4065_v61 }
 0x606   : > { %4067 = vmatprep.subr.bf16.mxu1 %v4282_v25 }
 0x607   : > { %3988 = vmatpush1.bf16.msra.mxu0 %v3987_v5  ;;  %v2832_v5 = vld [vmem:[%s6057_s7 + $0x60] sm:$0xff] }
 0x608   : > { %3989 = vmatprep.subr.bf16.mxu0 %v4282_v25  ;;  %v4074_v8 = vpack.c.bf16 %v2833_v6, %v2832_v5 }
 0x609   : > { %4069 = vmatpush3.bf16.msra.mxu1 %v4068_v0 }
 0x60a   : > { %4070 = vmatprep.subr.bf16.mxu1 %v4282_v25 }
 0x60b   : > { %3991 = vmatpush1.bf16.msra.mxu0 %v3990_v9  ;;  %v2911_v9 = vld [vmem:[%s6059_s9] sm:$0xff] }
 0x60c   : > { %3992 = vmatprep.subr.bf16.mxu0 %v4282_v25 }
 0x60d   : > { %4072 = vmatpush3.bf16.msra.mxu1 %v4071_v3 }
 0x60e   : > { %4073 = vmatprep.subr.bf16.mxu1 %v4282_v25 }
 0x60f   : > { %3994 = vmatpush1.bf16.msra.mxu0 %v3993_v15  ;;  %v4077_v15 = vpack.c.bf16 %v2912_v10, %v2911_v9 }
 0x610   : > { %3995 = vmatprep.subr.bf16.mxu0 %v4282_v25 }
 0x611   : > { %4075 = vmatpush3.bf16.msra.mxu1 %v4074_v8 }
 0x612   : > { %3538 = vmatprep.subr.mxu1 %v4278_v7 }
 0x613   : > { %3997 = vmatpush1.bf16.msra.mxu0 %v3996_v20  ;;  %v4080_v20 = vpack.c.bf16 %v2914_v18, %v2913_v11 }
 0x614   : > { %3998 = vmatprep.subr.bf16.mxu0 %v4282_v25 }
 0x615   : > { %3539 = vmatpush3.msra.mxu1 %v2834_v19 }
 0x617   : > { %4000 = vmatpush1.bf16.msra.mxu0 %v3999_v22  ;;  %v4083_v22 = vpack.c.bf16 %v2916_v41, %v2915_v21 }
 0x618   : > { %4028 = vmatprep.subr.bf16.mxu0 %v4282_v25 }
 0x61a   : > { %2603 = vmatmul.mubr.f32.vlgmr.msra.gmra.mrb[14].mxu0 %v2530_v28 }
 0x61b   : > { %4030 = vmatpush1.bf16.msra.mxu0 %v4029_v27  ;;  %3474 = vmatprep.mubr.msk.f32.mxu0 %vm2350_vm9, %v2742_v32 }
 0x61c   : > { %4031 = vmatprep.subr.bf16.mxu0 %v4282_v25 }
 0x61f   : > { %4033 = vmatpush1.bf16.msra.mxu0 %v4032_v33 }
 0x620   : > { %4034 = vmatprep.subr.bf16.mxu0 %v4282_v25 }
 0x623   : > { %4036 = vmatpush1.bf16.msra.mxu0 %v4035_v34 }
 0x624   : > { %4037 = vmatprep.subr.bf16.mxu0 %v4282_v25 }
 0x627   : > { %4039 = vmatpush1.bf16.msra.mxu0 %v4038_v37 }
 0x628   : > { %4040 = vmatprep.subr.bf16.mxu0 %v4282_v25 }
 0x62b   : > { %4042 = vmatpush1.bf16.msra.mxu0 %v4041_v39 }
 0x62c   : > { %4043 = vmatprep.subr.bf16.mxu0 %v4282_v25 }
 0x62f   : > { %4045 = vmatpush1.bf16.msra.mxu0 %v4044_v43  ;;  %v2920_v43 = vld [vmem:[%s6059_s9 + $0x48] sm:$0xff] }
 0x630   : > { %4046 = vmatprep.subr.bf16.mxu0 %v4282_v25 }
 0x633   : > { %4048 = vmatpush1.bf16.msra.mxu0 %v4047_v47  ;;  %v2835_v47 = vld [vmem:[%s6058_s8] sm:$0x1] }
 0x634   : > { %4049 = vmatprep.subr.bf16.mxu0 %v4282_v25 }
 0x637   : > { %4051 = vmatpush1.bf16.msra.mxu0 %v4050_v50 }
 0x638   : > { %4052 = vmatprep.subr.bf16.mxu0 %v4282_v25 }
 0x63b   : > { %4054 = vmatpush1.bf16.msra.mxu0 %v4053_v23 }
 0x63c   : > { %4076 = vmatprep.subr.bf16.mxu0 %v4282_v25 }
 0x63e   : > { %2811 = vmatmul.mubr.f32.vlgmr.msra.gmra.mrb[16].mxu0 %v2738_v17 }
 0x63f   : > { %3565 = vmatprep.mubr.msk.f32.mxu0 %vm4283_vm10, %v4278_v7  ;;  %4078 = vmatpush3.bf16.msra.mxu0 %v4077_v15 }
 0x640   : > { %4079 = vmatprep.subr.bf16.mxu0 %v4282_v25 }
 0x643   : > { %4081 = vmatpush3.bf16.msra.mxu0 %v4080_v20 }
 0x644   : > { %4082 = vmatprep.subr.bf16.mxu0 %v4282_v25 }
 0x647   : > { %4084 = vmatpush3.bf16.msra.mxu0 %v4083_v22 }
 0x648   : > { %4085 = vmatprep.subr.bf16.mxu0 %v4282_v25 }
 0x64b   : > { %4087 = vmatpush3.bf16.msra.mxu0 %v4086_v26 }
 0x64c   : > { %4088 = vmatprep.subr.bf16.mxu0 %v4282_v25  ;;  %v2919_v25 = vld [vmem:[%s6059_s9 + $0x40] sm:$0xff] }
 0x64d   : > { %v4089_v44 = vpack.c.bf16 %v2920_v43, %v2919_v25 }
 0x64f   : > { %4090 = vmatpush3.bf16.msra.mxu0 %v4089_v44 }
 0x650   : > { %3563 = vmatprep.subr.mxu0 %v4278_v7  ;;  %v2922_v7 = vld [vmem:[%s6060_s10] sm:$0x1] }
 0x653   : > { %3564 = vmatpush3.msk.msra.mxu0 %vm1177_vm4, %v2921_v45  ;;  %vm3000_vm4 = vcmask 155648  }
 0x6a5   : > { %v2419_v27 = vpop.f32.mrb[10].mxu0  ;;  %v2708_v28 = vpop.f32.mrb[14].mxu1 }
 0x6a6   : > { %v2421_v29 = vpop.f32.mrb[11].mxu0  ;;  %v2710_v30 = vpop.f32.mrb[15].mxu1 }
 0x6c9   : > { %v2501_v32 = vpop.f32.mrb[12].mxu0 }
 0x6ca   : > { %v2502_v33 = vadd.f32 %v2501_v32, %v2419_v27  ;;  %v2503_v13 = vpop.f32.mrb[13].mxu0 }
 0x6ed   : > { %v2604_v35 = vpop.f32.mrb[14].mxu0 }
 0x6ee   : > { %v2608_v34 = vadd.f32 %v2604_v35, %v2502_v33  ;;  %v2606_v16 = vpop.f32.mrb[15].mxu0 }
 0x6f0   : > { %v2712_v36 = vadd.f32 %v2708_v28, %v2608_v34 }
 0x711   : > { %v2812_v37 = vpop.f32.mrb[16].mxu0 }
 0x712   : > { %v2816_v38 = vadd.f32 %v2812_v37, %v2712_v36  ;;  %v2814_v39 = vpop.f32.mrb[17].mxu0 }
 0x714   : > { %v2818_v40 = vadd.f32 %v2817_v4, %v2816_v38 }
 0x716   : > { %v2819_v42 = vmax.f32 %v2818_v40, 0.0 }
 0x718   : > { %3541 = vmatmul.mubr.msk.f32.vlgmr.msra.gmra.mrb[16].mxu1 %vm2836_vm11, %v2819_v42 }
 0x7eb   : > { %v2906_v48 = vpop.f32.mrb[16].mxu1 }
 0x7ec   : > { %v2907_v49 = vadd.f32 %v2906_v48, %v2835_v47  ;;  %v3542_v50 = vpop.f32.mrb[17].mxu1 }
 0x7ee   : > { %v2910_v51 = vmax.f32 %v2907_v49, 0.0 }
 0x7f0   : > { %3566 = vmatmul.mubr.msk.f32.vlgmr.msra.gmra.mrb[18].mxu0 %vm2923_vm12, %v2910_v51 }
 0x8c3   : > { %v2996_v52 = vpop.f32.mrb[18].mxu0 }
 0x8c4   : > { %v2997_v23 = vadd.f32 %v2996_v52, %v2922_v7  ;;  %v3567_v17 = vpop.f32.mrb[19].mxu0 }
 0x8c6   : > { %3001 = vst.msk [vmem:[%s378_s29] sm:$0x1] %vm3000_vm4, %v2997_v23 }
 0x8c7   : > { %4227 = shalt.err (!%p4224_p3)
}
 0x8c8   : > { %s4228_s12 = scalar_lea.hbm %s6008_s30, 16  ;;  %s4232_s29 = scalar_lea.hbm %s6061_s11, 32 }
 0x8c9   : > { %p4229_p4 = scmp.ne.s32.totalorder %s6008_s30, %s4228_s12  ;;  %p4233_p9 = scmp.lt.u32.totalorder %s6008_s30, %s6061_s11 }
 0x8ca   : > { %p4234_p10 = scmp.lt.u32.totalorder %s4232_s29, %s4228_s12  ;;  %p4236_p12 = scmp.lt.u32.totalorder %s4228_s12, %s6008_s30 }
 0x8cb   : > { %p4230_p7 = pnand %p4229_p4, %p4383_p5 }
 0x8cc   : > { %p4235_p11 = por %p4234_p10, %p4233_p9 }
 0x8cd   : > { %p4231_p8 = pneg %p4230_p7 }
 0x8ce   : > { %p4237_p13 = por %p4236_p12, %p4235_p11 }
 0x8d0   : > { %p4238_p0 = pnand %p4237_p13, %p4231_p8 }
 0x8d2   : > { %4241 = shalt.err (!%p4238_p0)
}
 0x8d3   : > { %4139 = dma.vmem_to_hbm [thread:$0]  (%p4383_p5), %s6010_s22, 16, %s6008_s30, %s3003_s13  }
 0x8d4 PF: > { %p4145_p1 = scmp.ge.s32.totalorder %s4276_s20, 2  ;;  %s3027_s14 = sand.u32 1, %s4264_s17  }
 0x8d5   : > { %s3028_s21 = scalar_lea.sflag [#allocation7], %s3027_s14 }
 0x8d6   : > { %p4142_p2 = pnand %p4145_p1, %p4387_p6 }
 0x8d8   : > { %4259 = dma.done.wait (!%p4142_p2), %s3028_s21, 16  }
 0x8d9   : > { %4261 = vsyncadd (!%p4142_p2), %s3028_s21, 4294967280  ;;  %s6069_s15 = sld [smem:[#allocation9_spill]]  ;;  %s6070_s19 = sld [smem:[#allocation10_spill]] }
 0x8da   : > { %p21_p3 = scmp.ge.s32.totalorder %s4370_s23, 4   ;;  %s6071_s17 = smov %s4268_s18 }
 0x8db   : > { %s6073_s20 = smov %s4370_s23 }
 0x8dc   :  { %23 = sbr.rel (!%p21_p3) target bundleno = 3 (0x3), region = 115 }
 0x8df   : > { %s6072_s18 = smov %s6069_s15 }
 0x8e3   :  { %3032 = vsyncpa [#allocation7], 1 }
 0x8e4   :  { %3034 = vsyncpa [#allocation7 + $0x1], 1 }

</bundles_post_ra>
